<compile_context>
chip_gen: v6e
topology: v6e:2x2x1
jax: 0.10.0
libtpu: 0.0.40
codegen_flags: <defaults>
</compile_context>

<pallas_src>
import jax
import jax.numpy as jnp
from jax.experimental import pallas as pl
from jax.experimental.pallas import tpu as pltpu

_EPS = 1e-5
_VMEM_LIMIT = 48 * 1024 * 1024   # above 32 MiB scoped default, below v7x 64 MiB physical

_CPARAMS_1D = pltpu.CompilerParams(dimension_semantics=("parallel",),
                                   vmem_limit_bytes=_VMEM_LIMIT)
_CPARAMS_2D = pltpu.CompilerParams(dimension_semantics=("parallel", "parallel"),
                                   vmem_limit_bytes=_VMEM_LIMIT)


# --------------------------------------------------------------------------
# Pallas kernels
# --------------------------------------------------------------------------
def _conv1_kernel(x_ref, w_ref, y_ref, p_ref):
    """1x1 conv as a row-tile matmul + BN1 per-tile partial sums.

    x_ref:(TR,Cin)  w_ref:(Cin,Cm)  y_ref:(TR,Cm)  p_ref:(1,2,Cm)
    (conv1 bias dropped: it cancels in the following BatchNorm.)
    """
    y = jnp.dot(x_ref[...], w_ref[...], preferred_element_type=jnp.float32)
    y_ref[...] = y.astype(y_ref.dtype)
    s = jnp.sum(y, axis=0, keepdims=True)
    ss = jnp.sum(y * y, axis=0, keepdims=True)
    p_ref[...] = jnp.concatenate([s, ss], axis=0)[None]


def _deconv_kernel(y_ref, yh_ref, s1_ref, wd_ref, d_ref, p_ref):
    """BN1-apply + ReLU, then ConvTranspose2d(3x3, s=2, p=1, op=1) decomposed
    into one stacked-tap matmul with shift-after-matmul; emits the 4 parity
    planes stacked on the lane axis plus BN2 per-tile partial sums.

    y_ref :(1,TH,W,Cm)   conv1 output tile (pre-BN)
    yh_ref:(1,1,W,Cm)    halo row (first row of next H tile, clamped at border)
    s1_ref:(2,Cm)        BN1 fused scale / shift
    wd_ref:(Cm,9*Cm)     taps stacked [hw | h,h | w,w | unshifted x4]
    d_ref :(1,TH,W,4*Cm) parity-stacked output [ee|eo|oe|oo]
    p_ref :(1,1,2,Cm)    per-tile sum / sum-of-squares over all 4 planes
    """
    _, TH, W, Cm = y_ref.shape
    f32 = jnp.float32
    cdt = wd_ref.dtype
    scale = s1_ref[0:1, :]
    shift = s1_ref[1:2, :]

    y = y_ref[0].reshape(TH * W, Cm).astype(f32)
    a = jnp.maximum(y * scale + shift, 0.0)
    ah = jnp.maximum(yh_ref[0, 0].astype(f32) * scale + shift, 0.0)      # (W, Cm)

    # zero the halo when this tile touches the bottom image border
    last_h = pl.program_id(1) == pl.num_programs(1) - 1
    ah = jnp.where(last_h, 0.0, 1.0).astype(f32) * ah

    t = jnp.dot(a.astype(cdt), wd_ref[...],
                preferred_element_type=f32).reshape(TH, W, 9 * Cm)
    # the halo row only feeds the H-shifted tap groups -> first 3*Cm columns
    t_halo = jnp.dot(ah.astype(cdt), wd_ref[:, 0:3 * Cm],
                     preferred_element_type=f32)                          # (W, 3Cm)

    g_hw = jnp.concatenate([t[:, :, 0:Cm], t_halo[None, :, 0:Cm]], axis=0)        # (TH+1,W,Cm)
    g_h = jnp.concatenate([t[:, :, Cm:3 * Cm], t_halo[None, :, Cm:3 * Cm]], axis=0)  # (TH+1,W,2Cm)
    g_w = t[:, :, 3 * Cm:5 * Cm]             # taps (1,0), (2,0)
    g_0 = t[:, :, 5 * Cm:9 * Cm]             # taps (1,1), (1,2), (2,1), (2,2)

    z1 = jnp.zeros((TH, 1, Cm), f32)
    z2 = jnp.zeros((TH, 1, 2 * Cm), f32)
    s_hw = jnp.concatenate([g_hw[1:, 1:, :], z1], axis=1)   # shift +1 in H and W
    s_h = g_h[1:]                                           # shift +1 in H
    s_w = jnp.concatenate([g_w[:, 1:, :], z2], axis=1)      # shift +1 in W

    ee = g_0[:, :, 0:Cm]
    eo = s_w[:, :, 0:Cm] + g_0[:, :, Cm:2 * Cm]
    oe = s_h[:, :, 0:Cm] + g_0[:, :, 2 * Cm:3 * Cm]
    oo = s_hw + s_h[:, :, Cm:2 * Cm] + s_w[:, :, Cm:2 * Cm] + g_0[:, :, 3 * Cm:4 * Cm]

    d = jnp.concatenate([ee, eo, oe, oo], axis=-1)          # (TH, W, 4Cm), lane-dense
    d_ref[...] = d[None].astype(d_ref.dtype)

    tot = (ee + eo + oe + oo).reshape(TH * W, Cm)
    sq = (ee * ee + eo * eo + oe * oe + oo * oo).reshape(TH * W, Cm)
    p_ref[...] = jnp.concatenate(
        [jnp.sum(tot, axis=0, keepdims=True), jnp.sum(sq, axis=0, keepdims=True)],
        axis=0).reshape(1, 1, 2, Cm)


def _conv3_kernel(d_ref, s2_ref, w_ref, c_ref, p_ref):
    """BN2-apply + ReLU + 1x1 conv3 as four per-parity-plane matmuls (keeps
    the output lane-dense, no 4x block-diagonal FLOP waste), + BN3 partials.

    d_ref:(TR,4Cm)  s2_ref:(2,4Cm)  w_ref:(Cm,Cout)  c_ref:(TR,4Cout)  p_ref:(1,2,Cout)
    """
    Cm = w_ref.shape[0]
    a = jnp.maximum(d_ref[...].astype(jnp.float32) * s2_ref[0:1, :] + s2_ref[1:2, :], 0.0)
    a = a.astype(w_ref.dtype)
    w = w_ref[...]
    outs = [jnp.dot(a[:, p * Cm:(p + 1) * Cm], w, preferred_element_type=jnp.float32)
            for p in range(4)]
    c = jnp.concatenate(outs, axis=-1)                       # (TR, 4Cout), lane-dense
    c_ref[...] = c.astype(c_ref.dtype)
    tot = outs[0] + outs[1] + outs[2] + outs[3]
    sq = outs[0] * outs[0] + outs[1] * outs[1] + outs[2] * outs[2] + outs[3] * outs[3]
    p_ref[...] = jnp.concatenate(
        [jnp.sum(tot, axis=0, keepdims=True), jnp.sum(sq, axis=0, keepdims=True)],
        axis=0)[None]


# --------------------------------------------------------------------------
# wrapper
# --------------------------------------------------------------------------
def _pick_row_tile(n_rows, target):
    if n_rows % 8 != 0:
        return n_rows
    t = min(target, n_rows)
    t -= t % 8
    while t >= 8:
        if n_rows % t == 0:
            return t
        t -= 8
    return n_rows


def _pick_h_tile(h, target):
    t = max(1, min(target, h))
    while h % t != 0:
        t -= 1
    return t


def _bn_scale_shift(sums, count, gamma, beta):
    """sums: (2, C) = [sum, sum_sq].  f32 throughout; variance clamped >= 0."""
    mean = sums[0] / float(count)
    var = jnp.maximum(sums[1] / float(count) - mean * mean, 0.0)
    scale = gamma * jax.lax.rsqrt(var + _EPS)
    return scale, beta - mean * scale


def prepare_params(params, compute_dtype=jnp.bfloat16):
    """One-time weight preprocessing (hoisted out of the per-call path).

    conv1_b / deconv_b / conv3_b are intentionally dropped: a per-channel bias
    added right before a BatchNorm cancels in (y - mean)."""
    cm, cin = params['conv1_w'].shape[:2]
    cout = params['conv3_w'].shape[0]
    f32 = jnp.float32

    w1 = jnp.transpose(params['conv1_w'].reshape(cm, cin), (1, 0))            # (Cin, Cm)
    wd = jnp.transpose(params['deconv_w'], (2, 3, 0, 1)).reshape(9, cm, cm)   # [kh*3+kw](ci,co)
    # group taps by required output shift: [hw | h,h | w,w | unshifted x4]
    order = (0, 1, 2, 3, 6, 4, 5, 7, 8)
    wd_stacked = jnp.concatenate([wd[k] for k in order], axis=1)              # (Cm, 9Cm)
    w3 = jnp.transpose(params['conv3_w'].reshape(cout, cm), (1, 0))           # (Cm, Cout)

    return {
        'w1': w1.astype(compute_dtype),
        'wd': wd_stacked.astype(compute_dtype),
        'w3': w3.astype(compute_dtype),
        'g1': params['bn1_g'].astype(f32), 'b1': params['bn1_b'].astype(f32),
        'g2': params['bn2_g'].astype(f32), 'b2': params['bn2_b'].astype(f32),
        'g3': params['bn3_g'].astype(f32), 'b3': params['bn3_b'].astype(f32),
        'dims': (cin, cm, cout),
        'compute_dtype': compute_dtype,
    }


def decoder_block(x_nchw, prep, *, row_tile=512, h_tile=8):
    cdt = prep['compute_dtype']
    f32 = jnp.float32
    cin, cm, cout = prep['dims']
    n, cin_x, h, w = x_nchw.shape
    assert cin_x == cin
    nr = n * h * w

    # NCHW -> NHWC -> (rows, Cin).
    # TODO(synk): keep NHWC end-to-end across decoder blocks to avoid this transpose.
    x2d = jnp.transpose(x_nchw, (0, 2, 3, 1)).reshape(nr, cin).astype(cdt)

    tr = _pick_row_tile(nr, row_tile)
    n_row_tiles = nr // tr

    # ---- stage A: conv1 (1x1) + BN1 partial stats -------------------------
    y1, p1 = pl.pallas_call(
        _conv1_kernel,
        grid=(n_row_tiles,),
        in_specs=[pl.BlockSpec((tr, cin), lambda i: (i, 0)),
                  pl.BlockSpec((cin, cm), lambda i: (0, 0))],
        out_specs=(pl.BlockSpec((tr, cm), lambda i: (i, 0)),
                   pl.BlockSpec((1, 2, cm), lambda i: (i, 0, 0))),
        out_shape=(jax.ShapeDtypeStruct((nr, cm), cdt),
                   jax.ShapeDtypeStruct((n_row_tiles, 2, cm), f32)),
        compiler_params=_CPARAMS_1D,
    )(x2d, prep['w1'])

    scale1, shift1 = _bn_scale_shift(p1.sum(axis=0), nr, prep['g1'], prep['b1'])
    s1 = jnp.stack([scale1, shift1], axis=0)                     # (2, Cm)

    # ---- stage B: BN1+ReLU, stacked-tap deconv, BN2 partial stats ---------
    th = _pick_h_tile(h, h_tile)
    n_h_tiles = h // th
    y4 = y1.reshape(n, h, w, cm)

    d, p2 = pl.pallas_call(
        _deconv_kernel,
        grid=(n, n_h_tiles),
        in_specs=[
            pl.BlockSpec((1, th, w, cm), lambda b, i: (b, i, 0, 0)),
            pl.BlockSpec((1, 1, w, cm),
                         lambda b, i: (b, jnp.minimum((i + 1) * th, h - 1), 0, 0)),
            pl.BlockSpec((2, cm), lambda b, i: (0, 0)),
            pl.BlockSpec((cm, 9 * cm), lambda b, i: (0, 0)),
        ],
        out_specs=(pl.BlockSpec((1, th, w, 4 * cm), lambda b, i: (b, i, 0, 0)),
                   pl.BlockSpec((1, 1, 2, cm), lambda b, i: (b, i, 0, 0))),
        out_shape=(jax.ShapeDtypeStruct((n, h, w, 4 * cm), cdt),
                   jax.ShapeDtypeStruct((n, n_h_tiles, 2, cm), f32)),
        compiler_params=_CPARAMS_2D,
    )(y4, y4, s1, prep['wd'])

    scale2, shift2 = _bn_scale_shift(p2.sum(axis=(0, 1)), 4 * nr, prep['g2'], prep['b2'])
    s2 = jnp.stack([jnp.tile(scale2, 4), jnp.tile(shift2, 4)], axis=0)   # (2, 4Cm)

    # ---- stage C: BN2+ReLU, conv3 (per-parity matmuls), BN3 partials ------
    d2 = d.reshape(nr, 4 * cm)
    c, p3 = pl.pallas_call(
        _conv3_kernel,
        grid=(n_row_tiles,),
        in_specs=[pl.BlockSpec((tr, 4 * cm), lambda i: (i, 0)),
                  pl.BlockSpec((2, 4 * cm), lambda i: (0, 0)),
                  pl.BlockSpec((cm, cout), lambda i: (0, 0))],
        out_specs=(pl.BlockSpec((tr, 4 * cout), lambda i: (i, 0)),
                   pl.BlockSpec((1, 2, cout), lambda i: (i, 0, 0))),
        out_shape=(jax.ShapeDtypeStruct((nr, 4 * cout), cdt),
                   jax.ShapeDtypeStruct((n_row_tiles, 2, cout), f32)),
        compiler_params=_CPARAMS_1D,
    )(d2, s2, prep['w3'])

    scale3, shift3 = _bn_scale_shift(p3.sum(axis=0), 4 * nr, prep['g3'], prep['b3'])

    # ---- BN3-apply + ReLU fused with parity interleave + NCHW transpose ----
    out = jnp.maximum(c.astype(f32).reshape(n, h, w, 4, cout) * scale3 + shift3, 0.0)
    out = out.reshape(n, h, w, 2, 2, cout)
    out = jnp.transpose(out, (0, 5, 1, 3, 2, 4)).reshape(n, cout, 2 * h, 2 * w)
    return out


# --------------------------------------------------------------------------
# pure-JAX reference (for verification; keeps the biases the kernel drops)
# --------------------------------------------------------------------------
def _reference_forward(x, p):
    def bn(y, g, b):
        m = y.mean(axis=(0, 2, 3), keepdims=True)
        v = ((y - m) ** 2).mean(axis=(0, 2, 3), keepdims=True)
        return (y - m) / jnp.sqrt(v + _EPS) * g.reshape(1, -1, 1, 1) + b.reshape(1, -1, 1, 1)

    y = jax.lax.conv_general_dilated(x, p['conv1_w'], (1, 1), 'VALID',
                                     dimension_numbers=('NCHW', 'OIHW', 'NCHW'))
    y = jax.nn.relu(bn(y + p['conv1_b'].reshape(1, -1, 1, 1), p['bn1_g'], p['bn1_b']))

    w = jnp.transpose(p['deconv_w'], (1, 0, 2, 3))[:, :, ::-1, ::-1]      # OIHW, flipped
    y = jax.lax.conv_general_dilated(y, w, (1, 1), [(1, 2), (1, 2)], lhs_dilation=(2, 2),
                                     dimension_numbers=('NCHW', 'OIHW', 'NCHW'))
    y = jax.nn.relu(bn(y + p['deconv_b'].reshape(1, -1, 1, 1), p['bn2_g'], p['bn2_b']))

    y = jax.lax.conv_general_dilated(y, p['conv3_w'], (1, 1), 'VALID',
                                     dimension_numbers=('NCHW', 'OIHW', 'NCHW'))
    y = jax.nn.relu(bn(y + p['conv3_b'].reshape(1, -1, 1, 1), p['bn3_g'], p['bn3_b']))
    return y


if __name__ == "__main__":
    key = jax.random.PRNGKey(0)
    ks = jax.random.split(key, 13)

    N, Cin, H, W = 2, 16, 8, 8
    n_filters = 8
    Cm = Cin // 4

    params = {
        'conv1_w': 0.2 * jax.random.normal(ks[0], (Cm, Cin, 1, 1), jnp.float32),
        'conv1_b': 0.1 * jax.random.normal(ks[1], (Cm,), jnp.float32),
        'bn1_g': 1.0 + 0.1 * jax.random.normal(ks[2], (Cm,), jnp.float32),
        'bn1_b': 0.1 * jax.random.normal(ks[3], (Cm,), jnp.float32),
        'deconv_w': 0.2 * jax.random.normal(ks[4], (Cm, Cm, 3, 3), jnp.float32),
        'deconv_b': 0.1 * jax.random.normal(ks[5], (Cm,), jnp.float32),
        'bn2_g': 1.0 + 0.1 * jax.random.normal(ks[6], (Cm,), jnp.float32),
        'bn2_b': 0.1 * jax.random.normal(ks[7], (Cm,), jnp.float32),
        'conv3_w': 0.2 * jax.random.normal(ks[8], (n_filters, Cm, 1, 1), jnp.float32),
        'conv3_b': 0.1 * jax.random.normal(ks[9], (n_filters,), jnp.float32),
        'bn3_g': 1.0 + 0.1 * jax.random.normal(ks[10], (n_filters,), jnp.float32),
        'bn3_b': 0.1 * jax.random.normal(ks[11], (n_filters,), jnp.float32),
    }
    x = jax.random.normal(ks[12], (N, Cin, H, W), jnp.float32)

    ref = jax.block_until_ready(_reference_forward(x, params))

    # strict semantics check in f32 (exercises multi-tile rows, H halos, batch)
    prep32 = prepare_params(params, compute_dtype=jnp.float32)
    run32 = jax.jit(lambda a: decoder_block(a, prep32, row_tile=32, h_tile=4))
    out32 = jax.block_until_ready(run32(x))
    assert out32.shape == (N, n_filters, 2 * H, 2 * W), out32.shape
    err32 = float(jnp.max(jnp.abs(out32 - ref)))
    assert err32 < 1e-3, f"f32 mismatch vs reference, max abs err = {err32}"

    # default bf16 MXU path (loose tolerance: bf16 rounding through 3 BN stages)
    prep16 = prepare_params(params)
    run16 = jax.jit(lambda a: decoder_block(a, prep16, row_tile=32, h_tile=4))
    out16 = jax.block_until_ready(run16(x))
    assert out16.shape == (N, n_filters, 2 * H, 2 * W), out16.shape
    err16 = float(jnp.max(jnp.abs(out16.astype(jnp.float32) - ref)))
    assert err16 < 5e-1, f"bf16 mismatch vs reference, max abs err = {err16}"

    print("KERNEL_OK")
</pallas_src>

<mosaic_0001>
module attributes {stable_mosaic.version = 11 : i64} {
  func.func @_conv1_kernel(%arg0: i32, %arg1: memref<32x16xf32, #tpu.memory_space<vmem>>, %arg2: memref<16x4xf32, #tpu.memory_space<vmem>>, %arg3: memref<32x4xf32, #tpu.memory_space<vmem>>, %arg4: memref<1x2x4xf32, #tpu.memory_space<vmem>>) attributes {dimension_semantics = [#tpu.dimension_semantics<parallel>], iteration_bounds = array<i64: 4>, scalar_prefetch = 0 : i64, scratch_operands = 0 : i64, tpu.core_type = #tpu.core_type<tc>, window_params = [{transform_indices = @transform_0, window_bounds = array<i64: 32, 16>}, {pipeline_mode = #tpu.pipeline_mode<synchronous>, transform_indices = @transform_1, window_bounds = array<i64: 16, 4>}, {transform_indices = @transform_2, window_bounds = array<i64: 32, 4>}, {transform_indices = @transform_3, window_bounds = array<i64: 1, 2, 4>}]} {
    %c0 = arith.constant 0 : index
    %c0_0 = arith.constant 0 : index
    %0 = vector.load %arg1[%c0, %c0_0] : memref<32x16xf32, #tpu.memory_space<vmem>>, vector<32x16xf32>
    %c0_1 = arith.constant 0 : index
    %c0_2 = arith.constant 0 : index
    %1 = vector.load %arg2[%c0_1, %c0_2] : memref<16x4xf32, #tpu.memory_space<vmem>>, vector<16x4xf32>
    %cst = arith.constant dense<0.000000e+00> : vector<32x4xf32>
    %2 = tpu.matmul %0, %1, %cst {dimension_numbers = #tpu.dot_dimension_numbers<[1], [0], [0], [1], [0, 0, 1, 1], [], []>} : vector<32x16xf32>, vector<16x4xf32>, vector<32x4xf32> -> vector<32x4xf32>
    %c0_3 = arith.constant 0 : index
    %c0_4 = arith.constant 0 : index
    %3 = vector.load %arg3[%c0_3, %c0_4] : memref<32x4xf32, #tpu.memory_space<vmem>>, vector<32x4xf32>
    tpu.vector_store %arg3[%c0_3, %c0_4], %2 {strides = array<i32>} : memref<32x4xf32, #tpu.memory_space<vmem>>, vector<32x4xf32>,
    %cst_5 = arith.constant dense<0.000000e+00> : vector<4xf32>
    %4 = vector.multi_reduction <add>, %2, %cst_5 [0] : vector<32x4xf32> to vector<4xf32>
    %5 = vector.shape_cast %4 : vector<4xf32> to vector<1x4xf32>
    %6 = arith.mulf %2, %2 : vector<32x4xf32>
    %cst_6 = arith.constant dense<0.000000e+00> : vector<4xf32>
    %7 = vector.multi_reduction <add>, %6, %cst_6 [0] : vector<32x4xf32> to vector<4xf32>
    %8 = vector.shape_cast %7 : vector<4xf32> to vector<1x4xf32>
    %9 = tpu.concatenate %5, %8 in 0 : vector<1x4xf32>, vector<1x4xf32> -> vector<2x4xf32>
    %10 = vector.shape_cast %9 : vector<2x4xf32> to vector<1x2x4xf32>
    %c0_7 = arith.constant 0 : index
    %c0_8 = arith.constant 0 : index
    %c0_9 = arith.constant 0 : index
    %11 = vector.load %arg4[%c0_7, %c0_8, %c0_9] : memref<1x2x4xf32, #tpu.memory_space<vmem>>, vector<1x2x4xf32>
    tpu.vector_store %arg4[%c0_7, %c0_8, %c0_9], %10 {strides = array<i32>} : memref<1x2x4xf32, #tpu.memory_space<vmem>>, vector<1x2x4xf32>,
    return
  }
  func.func @transform_0(%arg0: i32) -> (i32, i32) {
    %c0_i32 = arith.constant 0 : i32
    %c0_i32_0 = arith.constant 0 : i32
    return %arg0, %c0_i32 : i32, i32
  }
  func.func @transform_1(%arg0: i32) -> (i32, i32) {
    %c0_i32 = arith.constant 0 : i32
    %c0_i32_0 = arith.constant 0 : i32
    %c0_i32_1 = arith.constant 0 : i32
    return %c0_i32, %c0_i32_0 : i32, i32
  }
  func.func @transform_2(%arg0: i32) -> (i32, i32) {
    %c0_i32 = arith.constant 0 : i32
    %c0_i32_0 = arith.constant 0 : i32
    return %arg0, %c0_i32 : i32, i32
  }
  func.func @transform_3(%arg0: i32) -> (i32, i32, i32) {
    %c0_i32 = arith.constant 0 : i32
    %c0_i32_0 = arith.constant 0 : i32
    %c0_i32_1 = arith.constant 0 : i32
    return %arg0, %c0_i32, %c0_i32_0 : i32, i32, i32
  }
}

module attributes {stable_mosaic.version = 11 : i64} {
  func.func @_deconv_kernel(%arg0: i32, %arg1: i32, %arg2: memref<1x4x8x4xf32, #tpu.memory_space<vmem>>, %arg3: memref<1x1x8x4xf32, #tpu.memory_space<vmem>>, %arg4: memref<2x4xf32, #tpu.memory_space<vmem>>, %arg5: memref<4x36xf32, #tpu.memory_space<vmem>>, %arg6: memref<1x4x8x16xf32, #tpu.memory_space<vmem>>, %arg7: memref<1x1x2x4xf32, #tpu.memory_space<vmem>>) attributes {dimension_semantics = [#tpu.dimension_semantics<parallel>, #tpu.dimension_semantics<parallel>], iteration_bounds = array<i64: 2, 2>, scalar_prefetch = 0 : i64, scratch_operands = 0 : i64, tpu.core_type = #tpu.core_type<tc>, window_params = [{transform_indices = @transform_0, window_bounds = array<i64: 1, 4, 8, 4>}, {transform_indices = @transform_1, window_bounds = array<i64: 1, 1, 8, 4>}, {pipeline_mode = #tpu.pipeline_mode<synchronous>, transform_indices = @transform_2, window_bounds = array<i64: 2, 4>}, {pipeline_mode = #tpu.pipeline_mode<synchronous>, transform_indices = @transform_3, window_bounds = array<i64: 4, 36>}, {transform_indices = @transform_4, window_bounds = array<i64: 1, 4, 8, 16>}, {transform_indices = @transform_5, window_bounds = array<i64: 1, 1, 2, 4>}]} {
    %c0 = arith.constant 0 : index
    %c0_0 = arith.constant 0 : index
    %0 = vector.load %arg4[%c0, %c0_0] : memref<2x4xf32, #tpu.memory_space<vmem>>, vector<1x4xf32>
    %c1 = arith.constant 1 : index
    %c0_1 = arith.constant 0 : index
    %1 = vector.load %arg4[%c1, %c0_1] : memref<2x4xf32, #tpu.memory_space<vmem>>, vector<1x4xf32>
    %c0_2 = arith.constant 0 : index
    %c0_3 = arith.constant 0 : index
    %c0_4 = arith.constant 0 : index
    %c0_5 = arith.constant 0 : index
    %2 = vector.load %arg2[%c0_2, %c0_3, %c0_4, %c0_5] : memref<1x4x8x4xf32, #tpu.memory_space<vmem>>, vector<1x4x8x4xf32>
    %3 = vector.shape_cast %2 : vector<1x4x8x4xf32> to vector<4x8x4xf32>
    %4 = vector.shape_cast %3 : vector<4x8x4xf32> to vector<32x4xf32>
    %5 = vector.broadcast %0 : vector<1x4xf32> to vector<32x4xf32>
    %6 = arith.mulf %4, %5 : vector<32x4xf32>
    %7 = vector.broadcast %1 : vector<1x4xf32> to vector<32x4xf32>
    %8 = arith.addf %6, %7 : vector<32x4xf32>
    %cst = arith.constant 0.000000e+00 : f32
    %9 = vector.broadcast %cst : f32 to vector<32x4xf32>
    %10 = arith.maximumf %8, %9 : vector<32x4xf32>
    %c0_6 = arith.constant 0 : index
    %c0_7 = arith.constant 0 : index
    %c0_8 = arith.constant 0 : index
    %c0_9 = arith.constant 0 : index
    %11 = vector.load %arg3[%c0_6, %c0_7, %c0_8, %c0_9] : memref<1x1x8x4xf32, #tpu.memory_space<vmem>>, vector<1x1x8x4xf32>
    %12 = vector.shape_cast %11 : vector<1x1x8x4xf32> to vector<8x4xf32>
    %13 = vector.broadcast %0 : vector<1x4xf32> to vector<8x4xf32>
    %14 = arith.mulf %12, %13 : vector<8x4xf32>
    %15 = vector.broadcast %1 : vector<1x4xf32> to vector<8x4xf32>
    %16 = arith.addf %14, %15 : vector<8x4xf32>
    %cst_10 = arith.constant 0.000000e+00 : f32
    %17 = vector.broadcast %cst_10 : f32 to vector<8x4xf32>
    %18 = arith.maximumf %16, %17 : vector<8x4xf32>
    %c1_i32 = arith.constant 1 : i32
    %19 = arith.cmpi eq, %arg1, %c1_i32 : i32
    %cst_11 = arith.constant 0.000000e+00 : f32
    %cst_12 = arith.constant 1.000000e+00 : f32
    %20 = arith.select %19, %cst_11, %cst_12 : f32
    %21 = vector.broadcast %20 : f32 to vector<8x4xf32>
    %22 = arith.mulf %21, %18 : vector<8x4xf32>
    %c0_13 = arith.constant 0 : index
    %c0_14 = arith.constant 0 : index
    %23 = vector.load %arg5[%c0_13, %c0_14] : memref<4x36xf32, #tpu.memory_space<vmem>>, vector<4x36xf32>
    %cst_15 = arith.constant dense<0.000000e+00> : vector<32x36xf32>
    %24 = tpu.matmul %10, %23, %cst_15 {dimension_numbers = #tpu.dot_dimension_numbers<[1], [0], [0], [1], [0, 0, 1, 1], [], []>} : vector<32x4xf32>, vector<4x36xf32>, vector<32x36xf32> -> vector<32x36xf32>
    %25 = vector.shape_cast %24 : vector<32x36xf32> to vector<4x8x36xf32>
    %c0_16 = arith.constant 0 : index
    %c0_17 = arith.constant 0 : index
    %26 = vector.load %arg5[%c0_16, %c0_17] : memref<4x36xf32, #tpu.memory_space<vmem>>, vector<4x12xf32>
    %cst_18 = arith.constant dense<0.000000e+00> : vector<8x12xf32>
    %27 = tpu.matmul %22, %26, %cst_18 {dimension_numbers = #tpu.dot_dimension_numbers<[1], [0], [0], [1], [0, 0, 1, 1], [], []>} : vector<8x4xf32>, vector<4x12xf32>, vector<8x12xf32> -> vector<8x12xf32>
    %28 = vector.extract_strided_slice %25 {offsets = [0, 0, 0], sizes = [4, 8, 4], strides = [1, 1, 1]} : vector<4x8x36xf32> to vector<4x8x4xf32>
    %29 = vector.extract_strided_slice %27 {offsets = [0, 0], sizes = [8, 4], strides = [1, 1]} : vector<8x12xf32> to vector<8x4xf32>
    %30 = vector.shape_cast %29 : vector<8x4xf32> to vector<1x8x4xf32>
    %31 = tpu.concatenate %28, %30 in 0 : vector<4x8x4xf32>, vector<1x8x4xf32> -> vector<5x8x4xf32>
    %32 = vector.extract_strided_slice %25 {offsets = [0, 0, 4], sizes = [4, 8, 8], strides = [1, 1, 1]} : vector<4x8x36xf32> to vector<4x8x8xf32>
    %33 = vector.extract_strided_slice %27 {offsets = [0, 4], sizes = [8, 8], strides = [1, 1]} : vector<8x12xf32> to vector<8x8xf32>
    %34 = vector.shape_cast %33 : vector<8x8xf32> to vector<1x8x8xf32>
    %35 = tpu.concatenate %32, %34 in 0 : vector<4x8x8xf32>, vector<1x8x8xf32> -> vector<5x8x8xf32>
    %36 = vector.extract_strided_slice %25 {offsets = [0, 0, 12], sizes = [4, 8, 8], strides = [1, 1, 1]} : vector<4x8x36xf32> to vector<4x8x8xf32>
    %37 = vector.extract_strided_slice %25 {offsets = [0, 0, 20], sizes = [4, 8, 16], strides = [1, 1, 1]} : vector<4x8x36xf32> to vector<4x8x16xf32>
    %cst_19 = arith.constant 0.000000e+00 : f32
    %38 = vector.broadcast %cst_19 : f32 to vector<4x1x4xf32>
    %cst_20 = arith.constant 0.000000e+00 : f32
    %39 = vector.broadcast %cst_20 : f32 to vector<4x1x8xf32>
    %40 = vector.extract_strided_slice %31 {offsets = [1, 1, 0], sizes = [4, 7, 4], strides = [1, 1, 1]} : vector<5x8x4xf32> to vector<4x7x4xf32>
    %41 = tpu.concatenate %40, %38 in 1 : vector<4x7x4xf32>, vector<4x1x4xf32> -> vector<4x8x4xf32>
    %42 = vector.extract_strided_slice %35 {offsets = [1, 0, 0], sizes = [4, 8, 8], strides = [1, 1, 1]} : vector<5x8x8xf32> to vector<4x8x8xf32>
    %43 = vector.extract_strided_slice %36 {offsets = [0, 1, 0], sizes = [4, 7, 8], strides = [1, 1, 1]} : vector<4x8x8xf32> to vector<4x7x8xf32>
    %44 = tpu.concatenate %43, %39 in 1 : vector<4x7x8xf32>, vector<4x1x8xf32> -> vector<4x8x8xf32>
    %45 = vector.extract_strided_slice %37 {offsets = [0, 0, 0], sizes = [4, 8, 4], strides = [1, 1, 1]} : vector<4x8x16xf32> to vector<4x8x4xf32>
    %46 = vector.extract_strided_slice %44 {offsets = [0, 0, 0], sizes = [4, 8, 4], strides = [1, 1, 1]} : vector<4x8x8xf32> to vector<4x8x4xf32>
    %47 = vector.extract_strided_slice %37 {offsets = [0, 0, 4], sizes = [4, 8, 4], strides = [1, 1, 1]} : vector<4x8x16xf32> to vector<4x8x4xf32>
    %48 = arith.addf %46, %47 : vector<4x8x4xf32>
    %49 = vector.extract_strided_slice %42 {offsets = [0, 0, 0], sizes = [4, 8, 4], strides = [1, 1, 1]} : vector<4x8x8xf32> to vector<4x8x4xf32>
    %50 = vector.extract_strided_slice %37 {offsets = [0, 0, 8], sizes = [4, 8, 4], strides = [1, 1, 1]} : vector<4x8x16xf32> to vector<4x8x4xf32>
    %51 = arith.addf %49, %50 : vector<4x8x4xf32>
    %52 = vector.extract_strided_slice %42 {offsets = [0, 0, 4], sizes = [4, 8, 4], strides = [1, 1, 1]} : vector<4x8x8xf32> to vector<4x8x4xf32>
    %53 = arith.addf %41, %52 : vector<4x8x4xf32>
    %54 = vector.extract_strided_slice %44 {offsets = [0, 0, 4], sizes = [4, 8, 4], strides = [1, 1, 1]} : vector<4x8x8xf32> to vector<4x8x4xf32>
    %55 = arith.addf %53, %54 : vector<4x8x4xf32>
    %56 = vector.extract_strided_slice %37 {offsets = [0, 0, 12], sizes = [4, 8, 4], strides = [1, 1, 1]} : vector<4x8x16xf32> to vector<4x8x4xf32>
    %57 = arith.addf %55, %56 : vector<4x8x4xf32>
    %58 = tpu.concatenate %45, %48, %51, %57 in 2 : vector<4x8x4xf32>, vector<4x8x4xf32>, vector<4x8x4xf32>, vector<4x8x4xf32> -> vector<4x8x16xf32>
    %59 = vector.shape_cast %58 : vector<4x8x16xf32> to vector<1x4x8x16xf32>
    %c0_21 = arith.constant 0 : index
    %c0_22 = arith.constant 0 : index
    %c0_23 = arith.constant 0 : index
    %c0_24 = arith.constant 0 : index
    %60 = vector.load %arg6[%c0_21, %c0_22, %c0_23, %c0_24] : memref<1x4x8x16xf32, #tpu.memory_space<vmem>>, vector<1x4x8x16xf32>
    tpu.vector_store %arg6[%c0_21, %c0_22, %c0_23, %c0_24], %59 {strides = array<i32>} : memref<1x4x8x16xf32, #tpu.memory_space<vmem>>, vector<1x4x8x16xf32>,
    %61 = arith.addf %45, %48 : vector<4x8x4xf32>
    %62 = arith.addf %61, %51 : vector<4x8x4xf32>
    %63 = arith.addf %62, %57 : vector<4x8x4xf32>
    %64 = vector.shape_cast %63 : vector<4x8x4xf32> to vector<32x4xf32>
    %65 = arith.mulf %45, %45 : vector<4x8x4xf32>
    %66 = arith.mulf %48, %48 : vector<4x8x4xf32>
    %67 = arith.addf %65, %66 : vector<4x8x4xf32>
    %68 = arith.mulf %51, %51 : vector<4x8x4xf32>
    %69 = arith.addf %67, %68 : vector<4x8x4xf32>
    %70 = arith.mulf %57, %57 : vector<4x8x4xf32>
    %71 = arith.addf %69, %70 : vector<4x8x4xf32>
    %72 = vector.shape_cast %71 : vector<4x8x4xf32> to vector<32x4xf32>
    %cst_25 = arith.constant dense<0.000000e+00> : vector<4xf32>
    %73 = vector.multi_reduction <add>, %64, %cst_25 [0] : vector<32x4xf32> to vector<4xf32>
    %74 = vector.shape_cast %73 : vector<4xf32> to vector<1x4xf32>
    %cst_26 = arith.constant dense<0.000000e+00> : vector<4xf32>
    %75 = vector.multi_reduction <add>, %72, %cst_26 [0] : vector<32x4xf32> to vector<4xf32>
    %76 = vector.shape_cast %75 : vector<4xf32> to vector<1x4xf32>
    %77 = tpu.concatenate %74, %76 in 0 : vector<1x4xf32>, vector<1x4xf32> -> vector<2x4xf32>
    %78 = vector.shape_cast %77 : vector<2x4xf32> to vector<1x1x2x4xf32>
    %c0_27 = arith.constant 0 : index
    %c0_28 = arith.constant 0 : index
    %c0_29 = arith.constant 0 : index
    %c0_30 = arith.constant 0 : index
    %79 = vector.load %arg7[%c0_27, %c0_28, %c0_29, %c0_30] : memref<1x1x2x4xf32, #tpu.memory_space<vmem>>, vector<1x1x2x4xf32>
    tpu.vector_store %arg7[%c0_27, %c0_28, %c0_29, %c0_30], %78 {strides = array<i32>} : memref<1x1x2x4xf32, #tpu.memory_space<vmem>>, vector<1x1x2x4xf32>,
    return
  }
  func.func @transform_0(%arg0: i32, %arg1: i32) -> (i32, i32, i32, i32) {
    %c0_i32 = arith.constant 0 : i32
    %c0_i32_0 = arith.constant 0 : i32
    %c0_i32_1 = arith.constant 0 : i32
    return %arg0, %arg1, %c0_i32, %c0_i32_0 : i32, i32, i32, i32
  }
  func.func @transform_1(%arg0: i32, %arg1: i32) -> (i32, i32, i32, i32) {
    %c1_i32 = arith.constant 1 : i32
    %0 = arith.addi %arg1, %c1_i32 : i32
    %c4_i32 = arith.constant 4 : i32
    %1 = arith.muli %0, %c4_i32 : i32
    %c7_i32 = arith.constant 7 : i32
    %2 = arith.minsi %1, %c7_i32 : i32
    %c0_i32 = arith.constant 0 : i32
    %c0_i32_0 = arith.constant 0 : i32
    %c0_i32_1 = arith.constant 0 : i32
    return %arg0, %2, %c0_i32, %c0_i32_0 : i32, i32, i32, i32
  }
  func.func @transform_2(%arg0: i32, %arg1: i32) -> (i32, i32) {
    %c0_i32 = arith.constant 0 : i32
    %c0_i32_0 = arith.constant 0 : i32
    %c0_i32_1 = arith.constant 0 : i32
    return %c0_i32, %c0_i32_0 : i32, i32
  }
  func.func @transform_3(%arg0: i32, %arg1: i32) -> (i32, i32) {
    %c0_i32 = arith.constant 0 : i32
    %c0_i32_0 = arith.constant 0 : i32
    %c0_i32_1 = arith.constant 0 : i32
    return %c0_i32, %c0_i32_0 : i32, i32
  }
  func.func @transform_4(%arg0: i32, %arg1: i32) -> (i32, i32, i32, i32) {
    %c0_i32 = arith.constant 0 : i32
    %c0_i32_0 = arith.constant 0 : i32
    %c0_i32_1 = arith.constant 0 : i32
    return %arg0, %arg1, %c0_i32, %c0_i32_0 : i32, i32, i32, i32
  }
  func.func @transform_5(%arg0: i32, %arg1: i32) -> (i32, i32, i32, i32) {
    %c0_i32 = arith.constant 0 : i32
    %c0_i32_0 = arith.constant 0 : i32
    %c0_i32_1 = arith.constant 0 : i32
    return %arg0, %arg1, %c0_i32, %c0_i32_0 : i32, i32, i32, i32
  }
}

module attributes {stable_mosaic.version = 11 : i64} {
  func.func @_conv3_kernel(%arg0: i32, %arg1: memref<32x16xf32, #tpu.memory_space<vmem>>, %arg2: memref<2x16xf32, #tpu.memory_space<vmem>>, %arg3: memref<4x8xf32, #tpu.memory_space<vmem>>, %arg4: memref<32x32xf32, #tpu.memory_space<vmem>>, %arg5: memref<1x2x8xf32, #tpu.memory_space<vmem>>) attributes {dimension_semantics = [#tpu.dimension_semantics<parallel>], iteration_bounds = array<i64: 4>, scalar_prefetch = 0 : i64, scratch_operands = 0 : i64, tpu.core_type = #tpu.core_type<tc>, window_params = [{transform_indices = @transform_0, window_bounds = array<i64: 32, 16>}, {pipeline_mode = #tpu.pipeline_mode<synchronous>, transform_indices = @transform_1, window_bounds = array<i64: 2, 16>}, {pipeline_mode = #tpu.pipeline_mode<synchronous>, transform_indices = @transform_2, window_bounds = array<i64: 4, 8>}, {transform_indices = @transform_3, window_bounds = array<i64: 32, 32>}, {transform_indices = @transform_4, window_bounds = array<i64: 1, 2, 8>}]} {
    %c0 = arith.constant 0 : index
    %c0_0 = arith.constant 0 : index
    %0 = vector.load %arg1[%c0, %c0_0] : memref<32x16xf32, #tpu.memory_space<vmem>>, vector<32x16xf32>
    %c0_1 = arith.constant 0 : index
    %c0_2 = arith.constant 0 : index
    %1 = vector.load %arg2[%c0_1, %c0_2] : memref<2x16xf32, #tpu.memory_space<vmem>>, vector<1x16xf32>
    %2 = vector.broadcast %1 : vector<1x16xf32> to vector<32x16xf32>
    %3 = arith.mulf %0, %2 : vector<32x16xf32>
    %c1 = arith.constant 1 : index
    %c0_3 = arith.constant 0 : index
    %4 = vector.load %arg2[%c1, %c0_3] : memref<2x16xf32, #tpu.memory_space<vmem>>, vector<1x16xf32>
    %5 = vector.broadcast %4 : vector<1x16xf32> to vector<32x16xf32>
    %6 = arith.addf %3, %5 : vector<32x16xf32>
    %cst = arith.constant 0.000000e+00 : f32
    %7 = vector.broadcast %cst : f32 to vector<32x16xf32>
    %8 = arith.maximumf %6, %7 : vector<32x16xf32>
    %c0_4 = arith.constant 0 : index
    %c0_5 = arith.constant 0 : index
    %9 = vector.load %arg3[%c0_4, %c0_5] : memref<4x8xf32, #tpu.memory_space<vmem>>, vector<4x8xf32>
    %10 = vector.extract_strided_slice %8 {offsets = [0, 0], sizes = [32, 4], strides = [1, 1]} : vector<32x16xf32> to vector<32x4xf32>
    %cst_6 = arith.constant dense<0.000000e+00> : vector<32x8xf32>
    %11 = tpu.matmul %10, %9, %cst_6 {dimension_numbers = #tpu.dot_dimension_numbers<[1], [0], [0], [1], [0, 0, 1, 1], [], []>} : vector<32x4xf32>, vector<4x8xf32>, vector<32x8xf32> -> vector<32x8xf32>
    %12 = vector.extract_strided_slice %8 {offsets = [0, 4], sizes = [32, 4], strides = [1, 1]} : vector<32x16xf32> to vector<32x4xf32>
    %cst_7 = arith.constant dense<0.000000e+00> : vector<32x8xf32>
    %13 = tpu.matmul %12, %9, %cst_7 {dimension_numbers = #tpu.dot_dimension_numbers<[1], [0], [0], [1], [0, 0, 1, 1], [], []>} : vector<32x4xf32>, vector<4x8xf32>, vector<32x8xf32> -> vector<32x8xf32>
    %14 = vector.extract_strided_slice %8 {offsets = [0, 8], sizes = [32, 4], strides = [1, 1]} : vector<32x16xf32> to vector<32x4xf32>
    %cst_8 = arith.constant dense<0.000000e+00> : vector<32x8xf32>
    %15 = tpu.matmul %14, %9, %cst_8 {dimension_numbers = #tpu.dot_dimension_numbers<[1], [0], [0], [1], [0, 0, 1, 1], [], []>} : vector<32x4xf32>, vector<4x8xf32>, vector<32x8xf32> -> vector<32x8xf32>
    %16 = vector.extract_strided_slice %8 {offsets = [0, 12], sizes = [32, 4], strides = [1, 1]} : vector<32x16xf32> to vector<32x4xf32>
    %cst_9 = arith.constant dense<0.000000e+00> : vector<32x8xf32>
    %17 = tpu.matmul %16, %9, %cst_9 {dimension_numbers = #tpu.dot_dimension_numbers<[1], [0], [0], [1], [0, 0, 1, 1], [], []>} : vector<32x4xf32>, vector<4x8xf32>, vector<32x8xf32> -> vector<32x8xf32>
    %18 = tpu.concatenate %11, %13, %15, %17 in 1 : vector<32x8xf32>, vector<32x8xf32>, vector<32x8xf32>, vector<32x8xf32> -> vector<32x32xf32>
    %c0_10 = arith.constant 0 : index
    %c0_11 = arith.constant 0 : index
    %19 = vector.load %arg4[%c0_10, %c0_11] : memref<32x32xf32, #tpu.memory_space<vmem>>, vector<32x32xf32>
    tpu.vector_store %arg4[%c0_10, %c0_11], %18 {strides = array<i32>} : memref<32x32xf32, #tpu.memory_space<vmem>>, vector<32x32xf32>,
    %20 = arith.addf %11, %13 : vector<32x8xf32>
    %21 = arith.addf %20, %15 : vector<32x8xf32>
    %22 = arith.addf %21, %17 : vector<32x8xf32>
    %23 = arith.mulf %11, %11 : vector<32x8xf32>
    %24 = arith.mulf %13, %13 : vector<32x8xf32>
    %25 = arith.addf %23, %24 : vector<32x8xf32>
    %26 = arith.mulf %15, %15 : vector<32x8xf32>
    %27 = arith.addf %25, %26 : vector<32x8xf32>
    %28 = arith.mulf %17, %17 : vector<32x8xf32>
    %29 = arith.addf %27, %28 : vector<32x8xf32>
    %cst_12 = arith.constant dense<0.000000e+00> : vector<8xf32>
    %30 = vector.multi_reduction <add>, %22, %cst_12 [0] : vector<32x8xf32> to vector<8xf32>
    %31 = vector.shape_cast %30 : vector<8xf32> to vector<1x8xf32>
    %cst_13 = arith.constant dense<0.000000e+00> : vector<8xf32>
    %32 = vector.multi_reduction <add>, %29, %cst_13 [0] : vector<32x8xf32> to vector<8xf32>
    %33 = vector.shape_cast %32 : vector<8xf32> to vector<1x8xf32>
    %34 = tpu.concatenate %31, %33 in 0 : vector<1x8xf32>, vector<1x8xf32> -> vector<2x8xf32>
    %35 = vector.shape_cast %34 : vector<2x8xf32> to vector<1x2x8xf32>
    %c0_14 = arith.constant 0 : index
    %c0_15 = arith.constant 0 : index
    %c0_16 = arith.constant 0 : index
    %36 = vector.load %arg5[%c0_14, %c0_15, %c0_16] : memref<1x2x8xf32, #tpu.memory_space<vmem>>, vector<1x2x8xf32>
    tpu.vector_store %arg5[%c0_14, %c0_15, %c0_16], %35 {strides = array<i32>} : memref<1x2x8xf32, #tpu.memory_space<vmem>>, vector<1x2x8xf32>,
    return
  }
  func.func @transform_0(%arg0: i32) -> (i32, i32) {
    %c0_i32 = arith.constant 0 : i32
    %c0_i32_0 = arith.constant 0 : i32
    return %arg0, %c0_i32 : i32, i32
  }
  func.func @transform_1(%arg0: i32) -> (i32, i32) {
    %c0_i32 = arith.constant 0 : i32
    %c0_i32_0 = arith.constant 0 : i32
    %c0_i32_1 = arith.constant 0 : i32
    return %c0_i32, %c0_i32_0 : i32, i32
  }
  func.func @transform_2(%arg0: i32) -> (i32, i32) {
    %c0_i32 = arith.constant 0 : i32
    %c0_i32_0 = arith.constant 0 : i32
    %c0_i32_1 = arith.constant 0 : i32
    return %c0_i32, %c0_i32_0 : i32, i32
  }
  func.func @transform_3(%arg0: i32) -> (i32, i32) {
    %c0_i32 = arith.constant 0 : i32
    %c0_i32_0 = arith.constant 0 : i32
    return %arg0, %c0_i32 : i32, i32
  }
  func.func @transform_4(%arg0: i32) -> (i32, i32, i32) {
    %c0_i32 = arith.constant 0 : i32
    %c0_i32_0 = arith.constant 0 : i32
    %c0_i32_1 = arith.constant 0 : i32
    return %arg0, %c0_i32, %c0_i32_0 : i32, i32, i32
  }
}

</mosaic_0001>

<bundles_post_ra>
// kernel: tile.13
= control target key start
LH: loop header
LB: loop body
LE: loop exit
PB: predicated region body
PF: predicated region fallthrough
CT: control target
= control target key end

     0   :  { %s22_s0 = inlined_call_operand.vmem [shape: f32[4], index: 0, kind: input, shape index: {}]   ;;  %s23_s1 = inlined_call_operand.vmem [shape: f32[4,4], index: 1, kind: output, shape index: {}]  }
   0x1   :  { %v4_v0 = vld [vmem:[%s22_s0] ss:$0 sm:$0xff] }
   0x2   :  { %5 = vst [vmem:[%s23_s1] sm:$0xf] %v4_v0 }

// kernel: tile.18
= control target key start
LH: loop header
LB: loop body
LE: loop exit
PB: predicated region body
PF: predicated region fallthrough
CT: control target
= control target key end

     0   :  { %vm8_vm0 = vcmask 31744   ;;  %s40_s8 = smov 4   ;;  %s41_s9 = smov 8   ;;  %vm14_vm1 = vcmask 130144   ;;  %vm20_vm2 = vcmask 97344   ;;  %vm26_vm3 = vcmask 64544   ;;  %s58_s0 = inlined_call_operand.vmem [shape: f32[4,4], index: 0, kind: input, shape index: {}]   ;;  %s59_s1 = inlined_call_operand.vmem [shape: f32[1,16], index: 1, kind: output, shape index: {}]  }
   0x1   :  { %v5_v0 = vld [vmem:[%s58_s0] sm:$0xf]  ;;  %s39_s0 = smov 12  }
   0x2   :  { %6 = vst [vmem:[#allocation1] sm:$0xf] %v5_v0 }
   0x9   :  { %v11_v1 = vld [vmem:[#allocation1 + $0x3] sm:$0x1]   ;;  %v23_v2 = vld [vmem:[#allocation1 + $0x1] sm:$0x1]   ;;  %v7_v3 = vld [vmem:[#allocation1] sm:$0x1]  }
   0xa   :  { %12 = vrot.lane.b32.xlu0 %v11_v1, %s39_s0  ;;  %24 = vrot.lane.b32.xlu1 %v23_v2, %s40_s8  ;;  %v17_v4 = vld [vmem:[#allocation1 + $0x2] sm:$0x1]   ;;  %9 = vst.msk [vmem:[#allocation0] sm:$0x1] %vm8_vm0, %v7_v3  }
   0xe   :  { %18 = vrot.lane.b32.xlu0 %v17_v4, %s41_s9 }
  0x7c   :  { %v13_v5 = vpop.permute.xlu0 %12   ;;  %v25_v6 = vpop.permute.xlu1 %24  }
  0x7d   :  { %15 = vst.msk [vmem:[#allocation0] sm:$0x1] %vm14_vm1, %v13_v5  }
  0x80   :  { %v19_v7 = vpop.permute.xlu0 %18  }
  0x81   :  { %21 = vst.msk [vmem:[#allocation0] sm:$0x1] %vm20_vm2, %v19_v7  }
  0x82   :  { %27 = vst.msk [vmem:[#allocation0] sm:$0x1] %vm26_vm3, %v25_v6  }
  0x89   :  { %v32_v8 = vld [vmem:[#allocation0] sm:$0x1] }
  0x8a   :  { %35 = vst [vmem:[%s59_s1] sm:$0x1] %v32_v8 }

// kernel: _lambda_.3
= control target key start
LH: loop header
LB: loop body
LE: loop exit
PB: predicated region body
PF: predicated region fallthrough
CT: control target
= control target key end

     0   :  { %9 = vsyncpa [#allocation3], 0  ;;  %s735_s0 = inlined_call_operand.hbm [shape: f32[128,16], index: 0, kind: input, shape index: {}]   ;;  %s736_s1 = inlined_call_operand.vmem [shape: f32[16,4], index: 1, kind: input, shape index: {}]   ;;  %s737_s2 = inlined_call_operand.vmem [shape: f32[128,4], index: 2, kind: output, shape index: {0}]   ;;  %s738_s3 = inlined_call_operand.vmem [shape: f32[4,2,4], index: 3, kind: output, shape index: {1}]  }
   0x1   :  { %11 = vsyncpa [#allocation3 + $0x1], 0  ;;  %s612_s12 = smov 0   ;;  %s614_s13 = smov 0  }
   0x2   :  { %s616_s14 = smov 0   ;;  %s618_s15 = smov 0  }
   0x3 LB: > { %s631_s16 = sadd.s32 4294967295, %s587_s15   ;;  %s634_s17 = sadd.s32 1, %s587_s15   ;;  %s587_s15 = sphi %s618_s15, %s747_s15   ;;  %s583_s14 = sphi %s616_s14, %s746_s14   ;;  %s579_s13 = sphi %s614_s13, %s745_s13   ;;  %s575_s12 = sphi %s612_s12, %s744_s12  }
   0x4   : > { %s21_s18 = ssub.s32 %s587_s15, %s634_s17  ;;  %s24_s19 = sadd.s32 1, %s583_s14 }
   0x5   : > { %p22_p0 = scmp.eq.s32.totalorder %s21_s18, 0  ;;  %p31_p1 = scmp.ne.s32.totalorder %s583_s14, %s579_s13 }
   0x6   : > { %p32_p2 = scmp.eq.s32.totalorder %s587_s15, 0  ;;  %p37_p3 = scmp.ne.s32.totalorder %s579_s13, %s575_s12 }
   0x7   : > { %s644_s20 = scalar_select %p22_p0, %s583_s14, %s24_s19  }
   0x8   : > { %p33_p4 = por %p32_p2, %p31_p1  ;;  %p38_p5 = scmp.eq.s32.totalorder %s631_s16, 0 }
   0x9   : > { %p490_p6 = scmp.lt.s32.totalorder %s587_s15, 4  ;;  %s137_s22 = sand.u32 1, %s583_s14  }
   0xa   : > { %p648_p7 = por %p38_p5, %p37_p3  ;;  %s449_s23 = sshll.u32 %s137_s22, 5 }
   0xb   : > { %s463_s24 = sshll.u32 %s587_s15, 9  ;;  %s141_s28 = scalar_lea.vmem [#allocation2], %s449_s23 }
   0xc   : > { %s740_s21 = scalar_select %p648_p7, 1, 0 }
   0xd   : > { %s657_s27 = scalar_lea.hbm %s735_s0, %s463_s24  ;;  %s148_s29 = sshll.u32 %s141_s28, 4  ;;  %s659_s29 = int_to_ptr.vmem [resolvable:$true] %s148_s29 }
   0xe   : > { %p661_p8 = pnand %p490_p6, %p33_p4  ;;  %s666_s4 = scalar_lea.sflag [#allocation3], %s137_s22 }
   0xf   : > { %s525_s5 = scalar_lea.hbm %s657_s27, 512  ;;  %s530_s8 = scalar_lea.hbm %s735_s0, 2048 }
  0x10   : > { %p526_p10 = scmp.ne.s32.totalorder %s657_s27, %s525_s5  ;;  %p527_p11 = pneg %p661_p8 }
  0x11   : > { %p531_p0 = scmp.lt.s32.totalorder %s657_s27, %s735_s0  ;;  %p532_p1 = scmp.lt.s32.totalorder %s530_s8, %s525_s5 }
  0x12   : > { %p528_p12 = pnand %p527_p11, %p526_p10 }
  0x13   : > { %p533_p2 = por %p532_p1, %p531_p0 }
  0x14   : > { %p529_p13 = pneg %p528_p12 }
  0x16   : > { %p534_p3 = pnand %p533_p2, %p529_p13 }
  0x18   : > { %537 = shalt.err (!%p534_p3)
}
  0x19   : > { %s538_s11 = scalar_lea.vmem %s659_s29, 512  ;;  %s589_s12 = smov [#allocation2]  }
  0x1a   : > { %p539_p4 = scmp.ne.s32.totalorder %s659_s29, %s538_s11  ;;  %s543_s18 = sshll.u32 %s589_s12, 4  ;;  %s544_s18 = int_to_ptr.vmem [resolvable:$false] %s543_s18 }
  0x1b   : > { %s545_s19 = scalar_lea.vmem %s544_s18, 1024  ;;  %p546_p10 = scmp.lt.s32.totalorder %s659_s29, %s544_s18 }
  0x1c   : > { %p541_p5 = pnand %p539_p4, %p527_p11  ;;  %p547_p12 = scmp.lt.s32.totalorder %s545_s19, %s538_s11 }
  0x1e   : > { %p542_p6 = pneg %p541_p5  ;;  %p548_p9 = por %p547_p12, %p546_p10 }
  0x20   : > { %p549_p7 = pnand %p548_p9, %p542_p6 }
  0x22   : > { %552 = shalt.err (!%p549_p7)
}
  0x23   : > { %s590_s22 = smov 128   ;;  %s591_s23 = smov 8  }
  0x24   : > { %489 = dma.hbm_to_vmem [thread:$0]  (!%p661_p8), %s657_s27, 512, %s659_s29, %s666_s4, %s590_s22, %s590_s22, %s591_s23  }
  0x25   : > { %p156_p11 = scmp.lt.s32.totalorder %s587_s15, 5  ;;  %p742_p13 = scmp.ge.s32.totalorder %s587_s15, 1 }
  0x27   : > { %p157_p0 = pnand %p742_p13, %p156_p11 }
  0x28   : > { %s162_s24 = sand.u32 (!%p157_p0), 1, %s579_s13   ;;  %p743_p7 = scmp.ne.s32.totalorder (!%p157_p0), %s740_s21, 0 }
  0x29   : > { %160 = sbr.rel (%p157_p0) target bundleno = 271 (0x10f), region = 28  ;;  %s453_s25 = sshll.u32 (!%p157_p0), %s162_s24, 5 }
  0x2a   : > { %s163_s26 = scalar_lea.sflag (!%p157_p0), [#allocation3], %s162_s24  ;;  %s166_s28 = scalar_lea.vmem (!%p157_p0), [#allocation2], %s453_s25 }
  0x2e   : > { %570 = dma.done.wait (%p743_p7), %s163_s26, 512  }
  0x2f   : > { %572 = vsyncadd (%p743_p7), %s163_s26, 4294966784  ;;  %v209_v0 = vld [vmem:[%s736_s1 + $0x8] sm:$0xff]  ;;  %v208_v1 = vld [vmem:[%s736_s1] sm:$0xff]  ;;  %vm210_vm0 = vcmask 130048   ;;  %s454_s15 = sshll.u32 %s631_s16, 2  ;;  %vm308_vm1 = vcmask 31744  }
  0x30   : > { %470 = vmatprep.subr.mxu0 %v209_v0  ;;  %480 = vmatprep.subr.mxu1 %v209_v0  ;;  %v204_v2 = vld [vmem:[%s166_s28] sm:$0xff]  ;;  %v206_v3 = vld [vmem:[%s166_s28 + $0x10] sm:$0xff]  ;;  %v205_v4 = vld [vmem:[%s166_s28 + $0x8] sm:$0xff]  ;;  %p195_p8 = scmp.lt.s32.totalorder %s454_s15, 15  ;;  %p200_p9 = scmp.lt.s32.totalorder %s631_s16, 3  ;;  %vm343_vm2 = vcmask 1040384  }
  0x31   : > { %471 = vmatpush3.msra.mxu0 %v209_v0  ;;  %482 = vmatpush3.msra.mxu1 %v209_v0  ;;  %v207_v5 = vld [vmem:[%s166_s28 + $0x18] sm:$0xff]  ;;  %vm345_vm3 = vcmask 25600  }
  0x32   : > { %472 = vmatprep.subr.mxu0 %v208_v1  ;;  %481 = vmatprep.subr.mxu1 %v208_v1  ;;  %s749_s15 = smov (!%p195_p8, %s454_s15), 15  ;;  %s751_s16 = smov (!%p200_p9, %s631_s16), 3 }
  0x33   : > { %473 = vmatpush3.msra.mxu0 %v208_v1  ;;  %483 = vmatpush3.msra.mxu1 %v208_v1  ;;  %s455_s21 = sshll.u32 %s749_s15, 3  ;;  %s456_s8 = sshll.u32 %s751_s16, 1 }
  0x34   : > { %474 = vmatprep.mubr.msk.f32.mxu0 %vm210_vm0, %v204_v2  ;;  %477 = vmatprep.mubr.msk.f32.mxu1 %vm210_vm0, %v206_v3  ;;  %s198_s7 = scalar_lea.vmem %s737_s2, %s455_s21  ;;  %s203_s11 = scalar_lea.vmem %s738_s3, %s456_s8 }
  0x35   : > { %475 = vmatmul.mubr.msk.f32.vlgmr.msra.gmra.mxu0 %vm210_vm0, %v205_v4  ;;  %478 = vmatmul.mubr.msk.f32.vlgmr.msra.gmra.mxu1 %vm210_vm0, %v207_v5 }
  0xf5   : > { %v476_v6 = vpop.f32.mrf.mxu0  ;;  %v479_v7 = vpop.f32.mrf.mxu1 }
  0xf6   : > { %310 = vst.msk [vmem:[%s198_s7 + $0x8] sm:$0xff] %vm308_vm1, %v476_v6  ;;  %v327_v8 = vmul.f32 %v476_v6, %v476_v6  ;;  %312 = vst.msk [vmem:[%s198_s7 + $0x18] sm:$0xff] %vm308_vm1, %v479_v7  ;;  %v314_v11 = vsel %vm308_vm1, %v476_v6, 0.0  ;;  %v329_v17 = vmul.f32 %v479_v7, %v479_v7  ;;  %v318_v22 = vsel %vm308_vm1, %v479_v7, 0.0 }
  0xf7   : > { %v289_v9 = vpop.f32.mrf.mxu0  ;;  %v299_v10 = vpop.f32.mrf.mxu1 }
  0xf8   : > { %309 = vst.msk [vmem:[%s198_s7] sm:$0xff] %vm308_vm1, %v289_v9  ;;  %v313_v12 = vsel %vm308_vm1, %v289_v9, 0.0  ;;  %v326_v13 = vmul.f32 %v289_v9, %v289_v9  ;;  %311 = vst.msk [vmem:[%s198_s7 + $0x10] sm:$0xff] %vm308_vm1, %v299_v10  ;;  %v328_v15 = vmul.f32 %v299_v10, %v299_v10  ;;  %v331_v16 = vsel %vm308_vm1, %v327_v8, 0.0 }
  0xf9   : > { %v315_v14 = vadd.f32 %v314_v11, %v313_v12  ;;  %v316_v19 = vsel %vm308_vm1, %v299_v10, 0.0  ;;  %v335_v26 = vsel %vm308_vm1, %v329_v17, 0.0 }
  0xfa   : > { %v330_v18 = vsel %vm308_vm1, %v326_v13, 0.0  ;;  %v333_v23 = vsel %vm308_vm1, %v328_v15, 0.0 }
  0xfb   : > { %v332_v20 = vadd.f32 %v331_v16, %v330_v18  ;;  %v317_v21 = vadd.f32 %v316_v19, %v315_v14 }
  0xfd   : > { %v319_v24 = vadd.f32 %v318_v22, %v317_v21  ;;  %v334_v25 = vadd.f32 %v333_v23, %v332_v20 }
  0xff   : > { %v320_v27 = vrot.slane %v319_v24, 4  ;;  %v336_v28 = vadd.f32 %v335_v26, %v334_v25 }
 0x101   : > { %v321_v29 = vadd.f32 %v320_v27, %v319_v24  ;;  %v337_v30 = vrot.slane %v336_v28, 4 }
 0x103   : > { %v322_v31 = vrot.slane %v321_v29, 2  ;;  %v338_v32 = vadd.f32 %v337_v30, %v336_v28 }
 0x105   : > { %v323_v33 = vadd.f32 %v322_v31, %v321_v29  ;;  %v339_v34 = vrot.slane %v338_v32, 2 }
 0x107   : > { %v324_v35 = vrot.slane %v323_v33, 1  ;;  %v340_v36 = vadd.f32 %v339_v34, %v338_v32 }
 0x109   : > { %v341_v37 = vrot.slane %v340_v36, 1  ;;  %v325_v38 = vadd.f32 %v324_v35, %v323_v33 }
 0x10b   : > { %v342_v39 = vadd.f32 %v341_v37, %v340_v36 }
 0x10d   : > { %v344_v40 = vsel %vm343_vm2, %v325_v38, %v342_v39 }
 0x10e   : > { %346 = vst.msk [vmem:[%s203_s11] sm:$0x3] %vm345_vm3, %v344_v40 }
 0x10f PF: > { %p14_p1 = scmp.ge.s32.totalorder %s634_s17, 6   ;;  %s744_s12 = smov %s579_s13 }
 0x110   : > { %s745_s13 = smov %s583_s14  ;;  %s746_s14 = smov %s644_s20 }
 0x111   : > { %s747_s15 = smov %s634_s17  ;;  %16 = sbr.rel (!%p14_p1) target bundleno = 3 (0x3), region = 80 }
 0x116   :  { %383 = vsyncpa [#allocation3], 1 }
 0x117   :  { %385 = vsyncpa [#allocation3 + $0x1], 1 }

// kernel: _lambda_.4
= control target key start
LH: loop header
LB: loop body
LE: loop exit
PB: predicated region body
PF: predicated region fallthrough
CT: control target
= control target key end

     0   :  { %s1246_s18 = smov 0   ;;  %s1248_s19 = smov 0   ;;  %s1493_s0 = inlined_call_operand.vmem [shape: f32[2,8,8,4], index: 0, kind: input, shape index: {}, may-alias: {0,1}]   ;;  %s1494_s1 = inlined_call_operand.vmem [shape: f32[2,8,8,4], index: 1, kind: input, shape index: {}, may-alias: {0,1}]   ;;  %s1495_s2 = inlined_call_operand.vmem [shape: f32[2,4], index: 2, kind: input, shape index: {}]   ;;  %s1496_s3 = inlined_call_operand.vmem [shape: f32[4,36], index: 3, kind: input, shape index: {}]   ;;  %s1497_s4 = inlined_call_operand.vmem [shape: f32[2,8,8,16], index: 4, kind: output, shape index: {0}]   ;;  %s1498_s5 = inlined_call_operand.vmem [shape: f32[2,2,2,4], index: 5, kind: output, shape index: {1}]  }
   0x1   :  { %s1250_s20 = smov 0   ;;  %s1252_s21 = smov 0  }
   0x2   :  { %s1254_s22 = smov 0  }
   0x3 LB: > { %s25_s23 = sadd.s32 1, %s1193_s20  ;;  %s28_s24 = sadd.s32 1, %s1197_s21  ;;  %s1201_s22 = sphi %s1254_s22, %s16_s22   ;;  %s1197_s21 = sphi %s1252_s21, %s1503_s21   ;;  %s1193_s20 = sphi %s1250_s20, %s1502_s20   ;;  %s1189_s19 = sphi %s1248_s19, %s1501_s19   ;;  %s1185_s18 = sphi %s1246_s18, %s1500_s18  }
   0x4   : > { %p26_p0 = scmp.ge.s32.totalorder %s25_s23, 2  ;;  %p1058_p1 = scmp.ge.s32.totalorder %s1201_s22, 1 }
   0x5   : > { %p244_p2 = scmp.lt.s32.totalorder %s1201_s22, 5 }
   0x6   : > { %s1505_s23 = smov (%p26_p0, %s25_s23), 0  ;;  %s1507_s24 = smov (!%p26_p0, %s28_s24), %s1197_s21 }
   0x7   : > { %p245_p3 = pnand %p1058_p1, %p244_p2  ;;  %p30_p4 = scmp.ge.s32.totalorder %s1507_s24, 2 }
   0x8   : > { %s1059_s27 = sshll.u32 (!%p245_p3), %s1185_s18, 2  ;;  %p301_p5 = scmp.lt.s32.totalorder (!%p245_p3), %s1189_s19, 1 }
   0x9   : > { %s1509_s24 = smov (%p30_p4, %s1507_s24), 0  ;;  %248 = sbr.rel (%p245_p3) target bundleno = 644 (0x284), region = 36 }
   0xa   : > { %p303_p6 = scmp.lt.s32.totalorder (!%p245_p3), %s1059_s27, 7  ;;  %s1089_s28 = sadd.s32 (!%p245_p3), 4, %s1059_s27 }
   0xb   : > { %p1285_p7 = scmp.lt.s32.totalorder (!%p245_p3), %s1089_s28, 7  ;;  %p374_p8 = scmp.eq.s32.totalorder (!%p245_p3), %s1185_s18, 1 }
   0xc   : > { %s1207_s30 = smov (!%p245_p3), 96   ;;  %s1208_s8 = smov (!%p245_p3), 104  }
   0xd   : > { %s1209_s9 = smov (!%p245_p3), 112   ;;  %s1210_s10 = smov (!%p245_p3), 8  }
   0xe   : > { %v378_v0 = vld [vmem:[%s1496_s3] sm:$0xf]  ;;  %vm392_vm0 = vcmask 1043456   ;;  %s1511_s19 = smov (!%p301_p5, %s1189_s19), 1  ;;  %s1513_s27 = smov (!%p303_p6, %s1059_s27), 7  ;;  %v1203_v1 = vmov 0.0  }
   0xf   : > { %1097 = vmatprep.subr.msk.mxu0 %vm392_vm0, %v378_v0  ;;  %1105 = vmatprep.subr.mxu1 %v1203_v1  ;;  %vm1204_vm1 = vmmov 0   ;;  %s1060_s29 = sshll.u32 %s1511_s19, 3  ;;  %v1073_v2 = vld [vmem:[%s1495_s2] ss:$0 sm:$0xff]  ;;  %v1074_v3 = vld [vmem:[%s1495_s2 + $0x1] ss:$0 sm:$0xff] }
  0x10   : > { %1098 = vmatpush3.msk.msra.mxu0 %vm392_vm0, %v378_v0  ;;  %1107 = vmatprep.mubr.msk.f32.mxu1 %vm1204_vm1, %v1203_v1  ;;  %s1289_s6 = sadd.s32 %s1060_s29, %s1513_s27  ;;  %s1515_s28 = smov (!%p1285_p7, %s1089_s28), 7  ;;  %vm379_vm2 = vcmask 31744   ;;  %vm566_vm3 = vcmask 1046528   ;;  %vm862_vm4 = vcmask 195744   ;;  %vm889_vm5 = vcmask 1040384  }
  0x11   : > { %1106 = vmatpush3.msk.msra.mxu1 %vm392_vm0, %v378_v0  ;;  %s1061_s7 = sshll.u32 %s1289_s6, 3  ;;  %s1517_s28 = smov (!%p1285_p7, %s1515_s28), 7  ;;  %vm723_vm6 = vcmask 64512   ;;  %vm728_vm7 = vcmask 97280   ;;  %vm733_vm8 = vcmask 130048   ;;  %vm895_vm9 = vcmask 25600  }
  0x12   : > { %s308_s12 = scalar_lea.vmem %s1493_s0, %s1061_s7  ;;  %s319_s15 = sadd.s32 %s1060_s29, %s1517_s28 }
  0x13   : > { %v346_v4 = vld [vmem:[%s308_s12] sm:$0xff]  ;;  %v347_v5 = vld [vmem:[%s308_s12 + $0x8] sm:$0xff]  ;;  %v348_v6 = vld [vmem:[%s308_s12 + $0x10] sm:$0xff]  ;;  %s1067_s16 = sshll.u32 %s319_s15, 3  ;;  %s1205_s28 = smov 120  }
  0x14   : > { %v354_v7 = vmul.f32 %v1073_v2, %v346_v4  ;;  %v355_v8 = vmul.f32 %v1073_v2, %v347_v5  ;;  %v356_v9 = vmul.f32 %v1073_v2, %v348_v6  ;;  %v349_v10 = vld [vmem:[%s308_s12 + $0x18] sm:$0xff]  ;;  %s321_s26 = scalar_lea.vmem %s1494_s1, %s1067_s16  ;;  %s1206_s29 = smov 116  }
  0x15   : > { %v357_v11 = vmul.f32 %v1073_v2, %v349_v10  ;;  %v370_v19 = vld [vmem:[%s321_s26] sm:$0xff]  ;;  %s375_s27 = scalar_select %p374_p8, 0.0, 1.0 }
  0x16   : > { %v362_v12 = vadd.f32 %v1074_v3, %v354_v7  ;;  %v363_v13 = vadd.f32 %v1074_v3, %v355_v8  ;;  %v364_v14 = vadd.f32 %v1074_v3, %v356_v9  ;;  %v371_v21 = vmul.f32 %v1073_v2, %v370_v19  ;;  %s1211_s11 = smov 16   ;;  %s1212_s12 = smov 20  }
  0x17   : > { %v365_v15 = vadd.f32 %v1074_v3, %v357_v11  ;;  %v376_v23 = vstv %s375_s27  ;;  %s1213_s13 = smov 108   ;;  %s1214_s14 = smov 4  }
  0x18   : > { %v366_v16 = vmax.f32 %v362_v12, 0.0  ;;  %v367_v17 = vmax.f32 %v363_v13, 0.0  ;;  %v368_v18 = vmax.f32 %v364_v14, 0.0  ;;  %v372_v22 = vadd.f32 %v1074_v3, %v371_v21  ;;  %s1215_s15 = smov 12   ;;  %s334_s25 = scalar_lea.vmem %s1497_s4, %s1061_s7 }
  0x19   : > { %v369_v20 = vmax.f32 %v365_v15, 0.0  ;;  %p338_p9 = scmp.lt.s32.totalorder %s1185_s18, 1  ;;  %s1071_s6 = sshll.u32 %s1511_s19, 1 }
  0x1a   : > { %1099 = vmatprep.mubr.msk.f32.mxu0 %vm379_vm2, %v366_v16  ;;  %v373_v24 = vmax.f32 %v372_v22, 0.0 }
  0x1b   : > { %1100 = vmatmul.mubr.msk.f32.vlgmr.msra.gmra.mxu0 %vm379_vm2, %v367_v17  ;;  %s1519_s18 = smov (!%p338_p9, %s1185_s18), 1 }
  0x1c   : > { %1102 = vmatprep.mubr.msk.f32.mxu0 %vm379_vm2, %v368_v18  ;;  %v377_v25 = vmul.f32 %v376_v23, %v373_v24  ;;  %s341_s7 = sadd.s32 %s1071_s6, %s1519_s18 }
  0x1d   : > { %s1072_s26 = sshll.u32 %s341_s7, 1 }
  0x1e   : > { %1108 = vmatmul.mubr.msk.f32.vlgmr.msra.gmra.mxu1 %vm379_vm2, %v377_v25 }
  0x1f   : > { %1103 = vmatmul.mubr.msk.f32.gmra.mxu0 %vm379_vm2, %v369_v20 }
  0xdb   : > { %v1316_v26 = vpop.f32.mrf.mxu0 }
  0xdc   : > { %607 = vrot.lane.b32.xlu1 %v1316_v26, %s1205_s28  ;;  %577 = vrot.lane.b32.xlu0 %v1316_v26, %s1206_s29  ;;  %v558_v28 = vrot.slane %v1316_v26, 1 }
  0xdd   : > { %v1325_v27 = vpop.f32.mrf.mxu0 }
  0xde   : > { %v1328_v29 = vpop.f32.mrf.mxu1  ;;  %v1334_v31 = vsel %vm566_vm3, %v558_v28, 0.0  ;;  %v572_v34 = vrot.slane %v1325_v27, 1 }
  0xdf   : > { %v1339_v32 = vpop.f32.mrf.mxu0  ;;  %v561_v16 = vrot.slane %v1328_v29, 1 }
  0xe0   : > { %645 = vrot.lane.b32.xlu1 %v1316_v26, %s1207_s30  ;;  %593 = vrot.lane.b32.xlu0 %v1316_v26, %s1208_s8  ;;  %v1109_v30 = vpop.f32.mrf.mxu1  ;;  %v560_v35 = vrot.slane %v1339_v32, 1  ;;  %v574_v36 = vsel %vm566_vm3, %v572_v34, 0.0 }
  0xe1   : > { %v1345_v33 = vpop.f32.mrf.mxu0  ;;  %v570_v21 = vsel %vm566_vm3, %v561_v16, 0.0 }
  0xe2   : > { %v1357_v37 = vsel %vm566_vm3, %v560_v35, 0.0  ;;  %v559_v38 = vrot.slane %v1345_v33, 1 }
  0xe4   : > { %591 = vrot.lane.b32.xlu1 %v1325_v27, %s1208_s8  ;;  %575 = vrot.lane.b32.xlu0 %v1325_v27, %s1206_s29  ;;  %v568_v39 = vsel %vm566_vm3, %v559_v38, 0.0 }
  0xe8   : > { %629 = vrot.lane.b32.xlu1 %v1334_v31, %s1209_s9  ;;  %643 = vrot.lane.b32.xlu0 %v1325_v27, %s1207_s30 }
  0xec   : > { %581 = vrot.lane.b32.xlu0 %v1339_v32, %s1206_s29  ;;  %611 = vrot.lane.b32.xlu1 %v1339_v32, %s1205_s28 }
  0xf0   : > { %613 = vrot.lane.b32.xlu0 %v1328_v29, %s1205_s28  ;;  %609 = vrot.lane.b32.xlu1 %v1345_v33, %s1205_s28 }
  0xf4   : > { %597 = vrot.lane.b32.xlu0 %v1339_v32, %s1208_s8  ;;  %595 = vrot.lane.b32.xlu1 %v1345_v33, %s1208_s8 }
  0xf8   : > { %627 = vrot.lane.b32.xlu0 %v574_v36, %s1209_s9  ;;  %633 = vrot.lane.b32.xlu1 %v1357_v37, %s1209_s9 }
  0xfc   : > { %579 = vrot.lane.b32.xlu0 %v1345_v33, %s1206_s29  ;;  %631 = vrot.lane.b32.xlu1 %v568_v39, %s1209_s9  ;;  %s343_s29 = scalar_lea.vmem %s1498_s5, %s1072_s26 }
 0x100   : > { %647 = vrot.lane.b32.xlu0 %v1345_v33, %s1207_s30  ;;  %649 = vrot.lane.b32.xlu1 %v1339_v32, %s1207_s30 }
 0x14e   : > { %v608_v40 = vpop.permute.xlu1 %607  ;;  %v578_v41 = vpop.permute.xlu0 %577 }
 0x14f   : > { %v1369_v42 = vadd.f32 %v578_v41, %v1334_v31  ;;  %v619_v8 = vadd.f32 %v608_v40, %v1334_v31 }
 0x151   : > { %740 = vrot.lane.b32.xlu1 %v1369_v42, %s1210_s10  ;;  %v791_v46 = vmul.f32 %v1369_v42, %v1369_v42 }
 0x152   : > { %v646_v43 = vpop.permute.xlu1 %645  ;;  %v594_v44 = vpop.permute.xlu0 %593 }
 0x153   : > { %v1374_v45 = vadd.f32 %v594_v44, %v1345_v33 }
 0x155   : > { %756 = vrot.lane.b32.xlu0 %v1374_v45, %s1211_s11  ;;  %800 = vrot.lane.b32.xlu1 %v791_v46, %s1210_s10  ;;  %v815_v54 = vmul.f32 %v1374_v45, %v1374_v45 }
 0x156   : > { %v592_v47 = vpop.permute.xlu1 %591  ;;  %v576_v48 = vpop.permute.xlu0 %575 }
 0x157   : > { %v1382_v49 = vadd.f32 %v1316_v26, %v592_v47  ;;  %v1384_v50 = vadd.f32 %v576_v48, %v574_v36 }
 0x159   : > { %738 = vrot.lane.b32.xlu0 %v1384_v50, %s1210_s10  ;;  %754 = vrot.lane.b32.xlu1 %v1382_v49, %s1211_s11  ;;  %v790_v53 = vmul.f32 %v1384_v50, %v1384_v50  ;;  %v814_v57 = vmul.f32 %v1382_v49, %v1382_v49 }
 0x15a   : > { %v630_v51 = vpop.permute.xlu1 %629  ;;  %v644_v52 = vpop.permute.xlu0 %643 }
 0x15d   : > { %798 = vrot.lane.b32.xlu0 %v790_v53, %s1210_s10  ;;  %824 = vrot.lane.b32.xlu1 %v815_v54, %s1211_s11 }
 0x15e   : > { %v582_v55 = vpop.permute.xlu0 %581  ;;  %v612_v56 = vpop.permute.xlu1 %611 }
 0x15f   : > { %v590_v60 = vadd.f32 %v582_v55, %v1357_v37  ;;  %v621_v14 = vadd.f32 %v612_v56, %v1357_v37 }
 0x161   : > { %822 = vrot.lane.b32.xlu0 %v814_v57, %s1211_s11  ;;  %v793_v7 = vmul.f32 %v590_v60, %v590_v60  ;;  %v787_v57 = vmul.f32 %v1316_v26, %v1316_v26 }
 0x162   : > { %v614_v58 = vpop.permute.xlu0 %613  ;;  %v610_v59 = vpop.permute.xlu1 %609 }
 0x163   : > { %v620_v4 = vadd.f32 %v610_v59, %v568_v39  ;;  %v622_v22 = vadd.f32 %v614_v58, %v570_v21 }
 0x165   : > { %744 = vrot.lane.b32.xlu0 %v590_v60, %s1210_s10  ;;  %v640_v9 = vadd.f32 %v630_v51, %v620_v4 }
 0x166   : > { %v598_v61 = vpop.permute.xlu0 %597  ;;  %v596_v62 = vpop.permute.xlu1 %595 }
 0x167   : > { %v606_v63 = vadd.f32 %v598_v61, %v1328_v29  ;;  %v605_v0 = vadd.f32 %v1339_v32, %v596_v62  ;;  %v656_v15 = vadd.f32 %v646_v43, %v640_v9  ;;  %v786_v61 = vmul.f32 %v1325_v27, %v1325_v27 }
 0x169   : > { %760 = vrot.lane.b32.xlu0 %v606_v63, %s1211_s11  ;;  %758 = vrot.lane.b32.xlu1 %v605_v0, %s1211_s11  ;;  %v816_v10 = vmul.f32 %v605_v0, %v605_v0  ;;  %v817_v12 = vmul.f32 %v606_v63, %v606_v63  ;;  %v839_v28 = vmul.f32 %v656_v15, %v656_v15 }
 0x16a   : > { %v628_v1 = vpop.permute.xlu0 %627  ;;  %v634_v6 = vpop.permute.xlu1 %633 }
 0x16b   : > { %v639_v11 = vadd.f32 %v628_v1, %v619_v8  ;;  %v642_v25 = vadd.f32 %v634_v6, %v622_v22 }
 0x16d   : > { %v655_v18 = vadd.f32 %v644_v52, %v639_v11 }
 0x16e   : > { %v580_v2 = vpop.permute.xlu0 %579  ;;  %v632_v13 = vpop.permute.xlu1 %631 }
 0x16f   : > { %v589_v3 = vadd.f32 %v580_v2, %v568_v39  ;;  %v641_v19 = vadd.f32 %v632_v13, %v621_v14  ;;  %v838_v23 = vmul.f32 %v655_v18, %v655_v18  ;;  %v789_v14 = vmul.f32 %v1339_v32, %v1339_v32 }
 0x171   : > { %742 = vrot.lane.b32.xlu0 %v589_v3, %s1210_s10  ;;  %v792_v5 = vmul.f32 %v589_v3, %v589_v3 }
 0x172   : > { %v648_v17 = vpop.permute.xlu0 %647  ;;  %v650_v24 = vpop.permute.xlu1 %649 }
 0x173   : > { %802 = vrot.lane.b32.xlu1 %v792_v5, %s1210_s10  ;;  %v657_v20 = vadd.f32 %v648_v17, %v641_v19  ;;  %v658_v30 = vadd.f32 %v650_v24, %v642_v25 }
 0x175   : > { %804 = vrot.lane.b32.xlu0 %v793_v7, %s1210_s10  ;;  %v840_v29 = vmul.f32 %v657_v20, %v657_v20  ;;  %v841_v31 = vmul.f32 %v658_v30, %v658_v30 }
 0x177   : > { %826 = vrot.lane.b32.xlu1 %v816_v10, %s1211_s11 }
 0x179   : > { %828 = vrot.lane.b32.xlu0 %v817_v12, %s1211_s11 }
 0x17b   : > { %772 = vrot.lane.b32.xlu1 %v656_v15, %s1212_s12 }
 0x17d   : > { %770 = vrot.lane.b32.xlu0 %v655_v18, %s1212_s12 }
 0x17f   : > { %774 = vrot.lane.b32.xlu1 %v657_v20, %s1212_s12 }
 0x181   : > { %846 = vrot.lane.b32.xlu0 %v838_v23, %s1212_s12 }
 0x183   : > { %848 = vrot.lane.b32.xlu1 %v839_v28, %s1212_s12 }
 0x185   : > { %776 = vrot.lane.b32.xlu0 %v658_v30, %s1212_s12 }
 0x187   : > { %850 = vrot.lane.b32.xlu1 %v840_v29, %s1212_s12 }
 0x189   : > { %659 = vrot.lane.b32.xlu0 %v1325_v27, %s1213_s13 }
 0x18b   : > { %852 = vrot.lane.b32.xlu1 %v841_v31, %s1212_s12 }
 0x18d   : > { %663 = vrot.lane.b32.xlu0 %v1345_v33, %s1213_s13 }
 0x18f   : > { %661 = vrot.lane.b32.xlu1 %v1316_v26, %s1213_s13 }
 0x191   : > { %675 = vrot.lane.b32.xlu0 %v1384_v50, %s1205_s28 }
 0x193   : > { %665 = vrot.lane.b32.xlu1 %v1339_v32, %s1213_s13 }
 0x195   : > { %679 = vrot.lane.b32.xlu0 %v589_v3, %s1205_s28 }
 0x197   : > { %677 = vrot.lane.b32.xlu1 %v1369_v42, %s1205_s28 }
 0x199   : > { %691 = vrot.lane.b32.xlu0 %v1382_v49, %s1214_s14 }
 0x19b   : > { %681 = vrot.lane.b32.xlu1 %v590_v60, %s1205_s28 }
 0x19d   : > { %695 = vrot.lane.b32.xlu0 %v605_v0, %s1214_s14 }
 0x19f   : > { %693 = vrot.lane.b32.xlu1 %v1374_v45, %s1214_s14 }
 0x1a1   : > { %707 = vrot.lane.b32.xlu0 %v655_v18, %s1215_s15 }
 0x1a3   : > { %697 = vrot.lane.b32.xlu1 %v606_v63, %s1214_s14 }
 0x1a5   : > { %711 = vrot.lane.b32.xlu0 %v657_v20, %s1215_s15 }
 0x1a7   : > { %709 = vrot.lane.b32.xlu1 %v656_v15, %s1215_s15 }
 0x1ab   : > { %713 = vrot.lane.b32.xlu1 %v658_v30, %s1215_s15 }
 0x1c3   : > { %v741_v35 = vpop.permute.xlu1 %740 }
 0x1c4   : > { %v751_v51 = vadd.f32 %v1316_v26, %v741_v35  ;;  %v788_v26 = vmul.f32 %v1345_v33, %v1345_v33 }
 0x1c7   : > { %v757_v34 = vpop.permute.xlu0 %756  ;;  %v801_v38 = vpop.permute.xlu1 %800 }
 0x1c8   : > { %v767_v54 = vadd.f32 %v757_v34, %v751_v51  ;;  %v811_v63 = vadd.f32 %v801_v38, %v787_v57 }
 0x1cb   : > { %v739_v36 = vpop.permute.xlu0 %738  ;;  %v755_v40 = vpop.permute.xlu1 %754 }
 0x1cc   : > { %v750_v49 = vadd.f32 %v739_v36, %v1325_v27 }
 0x1ce   : > { %v766_v55 = vadd.f32 %v755_v40, %v750_v49 }
 0x1cf   : > { %v799_v37 = vpop.permute.xlu0 %798  ;;  %v825_v42 = vpop.permute.xlu1 %824 }
 0x1d0   : > { %v810_v2 = vadd.f32 %v799_v37, %v786_v61  ;;  %v835_v4 = vadd.f32 %v825_v42, %v811_v63 }
 0x1d3   : > { %v823_v39 = vpop.permute.xlu0 %822 }
 0x1d4   : > { %v834_v7 = vadd.f32 %v823_v39, %v810_v2 }
 0x1d7   : > { %v745_v41 = vpop.permute.xlu0 %744 }
 0x1d8   : > { %v753_v5 = vadd.f32 %v1339_v32, %v745_v41 }
 0x1db   : > { %v761_v43 = vpop.permute.xlu0 %760  ;;  %v759_v44 = vpop.permute.xlu1 %758 }
 0x1dc   : > { %v769_v27 = vadd.f32 %v761_v43, %v753_v5 }
 0x1e3   : > { %v743_v46 = vpop.permute.xlu0 %742 }
 0x1e4   : > { %v752_v52 = vadd.f32 %v743_v46, %v1345_v33 }
 0x1e5   : > { %v803_v47 = vpop.permute.xlu1 %802 }
 0x1e6   : > { %v768_v60 = vadd.f32 %v759_v44, %v752_v52  ;;  %v812_v10 = vadd.f32 %v803_v47, %v788_v26 }
 0x1e7   : > { %v805_v45 = vpop.permute.xlu0 %804 }
 0x1e8   : > { %v813_v33 = vadd.f32 %v805_v45, %v789_v14 }
 0x1e9   : > { %v827_v48 = vpop.permute.xlu1 %826 }
 0x1ea   : > { %v836_v15 = vadd.f32 %v827_v48, %v812_v10 }
 0x1eb   : > { %v829_v50 = vpop.permute.xlu0 %828 }
 0x1ec   : > { %v837_v25 = vadd.f32 %v829_v50, %v813_v33 }
 0x1ed   : > { %v773_v53 = vpop.permute.xlu1 %772 }
 0x1ee   : > { %v783_v58 = vadd.f32 %v773_v53, %v767_v54 }
 0x1ef   : > { %v771_v56 = vpop.permute.xlu0 %770 }
 0x1f0   : > { %v782_v59 = vadd.f32 %v771_v56, %v766_v55  ;;  %v864_v6 = vsel %vm862_vm4, %v783_v58, 0.0 }
 0x1f1   : > { %v775_v62 = vpop.permute.xlu1 %774 }
 0x1f2   : > { %v863_v0 = vsel %vm862_vm4, %v782_v59, 0.0  ;;  %v784_v1 = vadd.f32 %v775_v62, %v768_v60 }
 0x1f3   : > { %v847_v3 = vpop.permute.xlu0 %846  ;;  %v865_v8 = vadd.f32 %v864_v6, %v863_v0 }
 0x1f4   : > { %v866_v11 = vsel %vm862_vm4, %v784_v1, 0.0  ;;  %v858_v16 = vadd.f32 %v847_v3, %v834_v7 }
 0x1f5   : > { %v849_v9 = vpop.permute.xlu1 %848  ;;  %v867_v18 = vadd.f32 %v866_v11, %v865_v8 }
 0x1f6   : > { %v859_v12 = vadd.f32 %v849_v9, %v835_v4  ;;  %v876_v28 = vsel %vm862_vm4, %v858_v16, 0.0 }
 0x1f7   : > { %v777_v13 = vpop.permute.xlu0 %776 }
 0x1f8   : > { %v785_v17 = vadd.f32 %v777_v13, %v769_v27  ;;  %v877_v20 = vsel %vm862_vm4, %v859_v12, 0.0 }
 0x1f9   : > { %v851_v19 = vpop.permute.xlu1 %850  ;;  %v878_v29 = vadd.f32 %v877_v20, %v876_v28 }
 0x1fa   : > { %v868_v21 = vsel %vm862_vm4, %v785_v17, 0.0  ;;  %v860_v22 = vadd.f32 %v851_v19, %v836_v15 }
 0x1fb   : > { %v869_v23 = vadd.f32 %v868_v21, %v867_v18  ;;  %v660_v24 = vpop.permute.xlu0 %659 }
 0x1fc   : > { %v879_v30 = vsel %vm862_vm4, %v860_v22, 0.0 }
 0x1fd   : > { %v870_v32 = vrot.slane %v869_v23, 4  ;;  %v853_v31 = vpop.permute.xlu1 %852  ;;  %v880_v36 = vadd.f32 %v879_v30, %v878_v29 }
 0x1fe   : > { %v861_v34 = vadd.f32 %v853_v31, %v837_v25 }
 0x1ff   : > { %v871_v35 = vadd.f32 %v870_v32, %v869_v23  ;;  %v664_v37 = vpop.permute.xlu0 %663 }
 0x200   : > { %v881_v38 = vsel %vm862_vm4, %v861_v34, 0.0 }
 0x201   : > { %v872_v39 = vrot.slane %v871_v35, 2  ;;  %v882_v40 = vadd.f32 %v881_v38, %v880_v36  ;;  %v662_v41 = vpop.permute.xlu1 %661 }
 0x203   : > { %v883_v42 = vrot.slane %v882_v40, 4  ;;  %v676_v43 = vpop.permute.xlu0 %675  ;;  %v873_v44 = vadd.f32 %v872_v39, %v871_v35 }
 0x204   : > { %v719_v60 = vsel %vm379_vm2, %v660_v24, %v676_v43 }
 0x205   : > { %v884_v46 = vadd.f32 %v883_v42, %v882_v40  ;;  %v666_v47 = vpop.permute.xlu1 %665  ;;  %v874_v51 = vrot.slane %v873_v44, 1 }
 0x207   : > { %v885_v45 = vrot.slane %v884_v46, 2  ;;  %v680_v48 = vpop.permute.xlu0 %679  ;;  %v875_v55 = vadd.f32 %v874_v51, %v873_v44 }
 0x208   : > { %v721_v1 = vsel %vm379_vm2, %v664_v37, %v680_v48 }
 0x209   : > { %v886_v49 = vadd.f32 %v885_v45, %v884_v46  ;;  %v678_v50 = vpop.permute.xlu1 %677 }
 0x20a   : > { %v720_v4 = vsel %vm379_vm2, %v662_v41, %v678_v50 }
 0x20b   : > { %v692_v52 = vpop.permute.xlu0 %691  ;;  %v887_v53 = vrot.slane %v886_v49, 1 }
 0x20c   : > { %v724_v61 = vsel %vm723_vm6, %v719_v60, %v692_v52 }
 0x20d   : > { %v682_v54 = vpop.permute.xlu1 %681  ;;  %v888_v56 = vadd.f32 %v887_v53, %v886_v49 }
 0x20e   : > { %v722_v8 = vsel %vm379_vm2, %v666_v47, %v682_v54 }
 0x20f   : > { %v696_v57 = vpop.permute.xlu0 %695  ;;  %v890_v58 = vsel %vm889_vm5, %v875_v55, %v888_v56 }
 0x210   : > { %892 = vrot.lane.b32.xlu0 %v890_v58, %s1213_s13  ;;  %v726_v2 = vsel %vm723_vm6, %v721_v1, %v696_v57 }
 0x211   : > { %v694_v59 = vpop.permute.xlu1 %693 }
 0x212   : > { %v725_v26 = vsel %vm723_vm6, %v720_v4, %v694_v59 }
 0x213   : > { %v708_v62 = vpop.permute.xlu0 %707 }
 0x214   : > { %v729_v63 = vsel %vm728_vm7, %v724_v61, %v708_v62 }
 0x215   : > { %734 = vst.msk [vmem:[%s334_s25] sm:$0xff] %vm733_vm8, %v729_v63  ;;  %v698_v0 = vpop.permute.xlu1 %697 }
 0x216   : > { %v727_v9 = vsel %vm723_vm6, %v722_v8, %v698_v0 }
 0x217   : > { %v712_v3 = vpop.permute.xlu0 %711 }
 0x218   : > { %v731_v5 = vsel %vm728_vm7, %v726_v2, %v712_v3 }
 0x219   : > { %736 = vst.msk [vmem:[%s334_s25 + $0x10] sm:$0xff] %vm733_vm8, %v731_v5  ;;  %v710_v6 = vpop.permute.xlu1 %709 }
 0x21a   : > { %v730_v7 = vsel %vm728_vm7, %v725_v26, %v710_v6 }
 0x21b   : > { %735 = vst.msk [vmem:[%s334_s25 + $0x8] sm:$0xff] %vm733_vm8, %v730_v7 }
 0x21d   : > { %v714_v27 = vpop.permute.xlu1 %713 }
 0x21e   : > { %v732_v10 = vsel %vm728_vm7, %v727_v9, %v714_v27 }
 0x21f   : > { %737 = vst.msk [vmem:[%s334_s25 + $0x18] sm:$0xff] %vm733_vm8, %v732_v10 }
 0x282   : > { %v893_v11 = vpop.permute.xlu0 %892 }
 0x283   : > { %896 = vst.msk [vmem:[%s343_s29] sm:$0x3] %vm895_vm9, %v893_v11 }
 0x284 PF: > { %s16_s22 = sadd.s32 1, %s1201_s22   ;;  %s1500_s18 = smov %s1193_s20 }
 0x285   : > { %p13_p10 = scmp.ge.s32.totalorder %s16_s22, 6   ;;  %s1501_s19 = smov %s1197_s21 }
 0x286   : > { %s1502_s20 = smov %s1505_s23  ;;  %s1503_s21 = smov %s1509_s24 }
 0x287   :  { %15 = sbr.rel (!%p13_p10) target bundleno = 3 (0x3), region = 81 }

// kernel: _lambda_.5
= control target key start
LH: loop header
LB: loop body
LE: loop exit
PB: predicated region body
PF: predicated region fallthrough
CT: control target
= control target key end

     0   :  { %s1008_s15 = smov 0   ;;  %s1125_s0 = inlined_call_operand.vmem [shape: f32[128,16], index: 0, kind: input, shape index: {}]   ;;  %s1126_s1 = inlined_call_operand.vmem [shape: f32[2,16], index: 1, kind: input, shape index: {}]   ;;  %s1127_s2 = inlined_call_operand.vmem [shape: f32[4,8], index: 2, kind: input, shape index: {}]   ;;  %s1128_s3 = inlined_call_operand.vmem [shape: f32[128,32], index: 3, kind: output, shape index: {0}]   ;;  %s1129_s4 = inlined_call_operand.vmem [shape: f32[4,2,8], index: 4, kind: output, shape index: {1}]  }
   0x1 LB: > { %s1014_s16 = sadd.s32 4294967295, %s975_s15   ;;  %p873_p0 = scmp.ge.s32.totalorder %s975_s15, 1  ;;  %s975_s15 = sphi %s1008_s15, %s15_s15  }
   0x2   : > { %p166_p1 = scmp.lt.s32.totalorder %s975_s15, 5 }
   0x4   : > { %p167_p2 = pnand %p873_p0, %p166_p1 }
   0x5   : > { %s874_s17 = sshll.u32 (!%p167_p2), %s1014_s16, 2  ;;  %s977_s28 = smov (!%p167_p2), 124  }
   0x6   : > { %170 = sbr.rel (%p167_p2) target bundleno = 473 (0x1d9), region = 32  ;;  %p197_p3 = scmp.lt.s32.totalorder (!%p167_p2), %s874_s17, 15 }
   0x7   : > { %s978_s29 = smov (!%p167_p2), 120   ;;  %s979_s30 = smov (!%p167_p2), 116  }
   0x8   : > { %s980_s5 = smov (!%p167_p2), 8   ;;  %s981_s6 = smov (!%p167_p2), 16  }
   0x9   : > { %s982_s7 = smov (!%p167_p2), 24   ;;  %p208_p4 = scmp.lt.s32.totalorder (!%p167_p2), %s1014_s16, 3 }
   0xb   : > { %v238_v0 = vld [vmem:[%s1127_s2] sm:$0xf]  ;;  %vm252_vm0 = vcmask 1043456   ;;  %s1131_s17 = smov (!%p197_p3, %s874_s17), 15  ;;  %vm239_vm1 = vcmask 31744   ;;  %vm692_vm2 = vcmask 64512  }
   0xc   : > { %923 = vmatprep.subr.msk.mxu0 %vm252_vm0, %v238_v0  ;;  %931 = vmatprep.subr.msk.mxu1 %vm252_vm0, %v238_v0  ;;  %s875_s20 = sshll.u32 %s1131_s17, 3  ;;  %v879_v1 = vld [vmem:[%s1126_s1] ss:$0 sm:$0xff]  ;;  %v880_v2 = vld [vmem:[%s1126_s1 + $0x1] ss:$0 sm:$0xff]  ;;  %s1133_s16 = smov (!%p208_p4, %s1014_s16), 3 }
   0xd   : > { %924 = vmatpush3.msk.msra.mxu0 %vm252_vm0, %v238_v0  ;;  %932 = vmatpush3.msk.msra.mxu1 %vm252_vm0, %v238_v0  ;;  %s200_s25 = scalar_lea.vmem %s1125_s0, %s875_s20  ;;  %s878_s8 = sshll.u32 %s1133_s16, 1  ;;  %vm778_vm3 = vcmask 1040384   ;;  %vm780_vm4 = vcmask 58368   ;;  %vm697_vm5 = vcmask 130048   ;;  %vm702_vm6 = vcmask 195584  }
   0xe   : > { %939 = vmatprep.subr.msk.mxu0 %vm252_vm0, %v238_v0  ;;  %947 = vmatprep.subr.msk.mxu1 %vm252_vm0, %v238_v0  ;;  %v212_v3 = vld [vmem:[%s200_s25] sm:$0xff]  ;;  %v214_v4 = vld [vmem:[%s200_s25 + $0x10] sm:$0xff]  ;;  %v213_v5 = vld [vmem:[%s200_s25 + $0x8] sm:$0xff]  ;;  %s211_s11 = scalar_lea.vmem %s1129_s4, %s878_s8  ;;  %s206_s14 = scalar_lea.vmem %s1128_s3, %s875_s20  ;;  %vm707_vm7 = vcmask 261120  }
   0xf   : > { %v221_v6 = vmul.f32 %v879_v1, %v212_v3  ;;  %v223_v7 = vmul.f32 %v879_v1, %v214_v4  ;;  %v222_v8 = vmul.f32 %v879_v1, %v213_v5  ;;  %v215_v9 = vld [vmem:[%s200_s25 + $0x18] sm:$0xff] }
  0x10   : > { %v224_v10 = vmul.f32 %v879_v1, %v215_v9 }
  0x11   : > { %v230_v11 = vadd.f32 %v880_v2, %v221_v6  ;;  %v232_v12 = vadd.f32 %v880_v2, %v223_v7  ;;  %v231_v13 = vadd.f32 %v880_v2, %v222_v8 }
  0x12   : > { %v233_v14 = vadd.f32 %v880_v2, %v224_v10 }
  0x13   : > { %v234_v15 = vmax.f32 %v230_v11, 0.0  ;;  %v236_v16 = vmax.f32 %v232_v12, 0.0  ;;  %v235_v17 = vmax.f32 %v231_v13, 0.0 }
  0x14   : > { %v237_v18 = vmax.f32 %v233_v14, 0.0 }
  0x15   : > { %341 = vrot.lane.b32.xlu0 %v234_v15, %s977_s28  ;;  %345 = vrot.lane.b32.xlu1 %v236_v16, %s977_s28 }
  0x16   : > { %925 = vmatprep.mubr.msk.f32.mxu0 %vm239_vm1, %v234_v15 }
  0x17   : > { %926 = vmatmul.mubr.msk.f32.vlgmr.msra.gmra.mxu0 %vm239_vm1, %v235_v17 }
  0x18   : > { %940 = vmatpush3.msk.msra.mxu0 %vm252_vm0, %v238_v0  ;;  %928 = vmatprep.mubr.msk.f32.mxu0 %vm239_vm1, %v236_v16 }
  0x19   : > { %343 = vrot.lane.b32.xlu0 %v235_v17, %s977_s28  ;;  %347 = vrot.lane.b32.xlu1 %v237_v18, %s977_s28 }
  0x1b   : > { %929 = vmatmul.mubr.msk.f32.gmra.mxu0 %vm239_vm1, %v237_v18 }
  0x1d   : > { %442 = vrot.lane.b32.xlu0 %v234_v15, %s978_s29  ;;  %444 = vrot.lane.b32.xlu1 %v235_v17, %s978_s29 }
  0x21   : > { %543 = vrot.lane.b32.xlu0 %v234_v15, %s979_s30  ;;  %545 = vrot.lane.b32.xlu1 %v235_v17, %s979_s30 }
  0x25   : > { %446 = vrot.lane.b32.xlu0 %v236_v16, %s978_s29  ;;  %448 = vrot.lane.b32.xlu1 %v237_v18, %s978_s29 }
  0x29   : > { %547 = vrot.lane.b32.xlu0 %v236_v16, %s979_s30  ;;  %549 = vrot.lane.b32.xlu1 %v237_v18, %s979_s30 }
  0x87   : > { %v342_v19 = vpop.permute.xlu0 %341  ;;  %v346_v20 = vpop.permute.xlu1 %345 }
  0x88   : > { %933 = vmatprep.mubr.msk.f32.mxu1 %vm239_vm1, %v342_v19 }
  0x8b   : > { %v344_v21 = vpop.permute.xlu0 %343  ;;  %v348_v22 = vpop.permute.xlu1 %347 }
  0x8c   : > { %934 = vmatmul.mubr.msk.f32.vlgmr.msra.gmra.mxu1 %vm239_vm1, %v344_v21 }
  0x8d   : > { %936 = vmatprep.mubr.msk.f32.mxu1 %vm239_vm1, %v346_v20  ;;  %948 = vmatpush3.msk.msra.mxu1 %vm252_vm0, %v238_v0 }
  0x8f   : > { %v443_v23 = vpop.permute.xlu0 %442  ;;  %v445_v24 = vpop.permute.xlu1 %444 }
  0x90   : > { %937 = vmatmul.mubr.msk.f32.gmra.mxu1 %vm239_vm1, %v348_v22  ;;  %941 = vmatprep.mubr.msk.f32.mxu0 %vm239_vm1, %v443_v23 }
  0x91   : > { %942 = vmatmul.mubr.msk.f32.vlgmr.msra.gmra.mxu0 %vm239_vm1, %v445_v24 }
  0x93   : > { %v544_v25 = vpop.permute.xlu0 %543  ;;  %v546_v26 = vpop.permute.xlu1 %545 }
  0x94   : > { %949 = vmatprep.mubr.msk.f32.mxu1 %vm239_vm1, %v544_v25 }
  0x95   : > { %950 = vmatmul.mubr.msk.f32.vlgmr.msra.gmra.mxu1 %vm239_vm1, %v546_v26 }
  0x97   : > { %v447_v27 = vpop.permute.xlu0 %446  ;;  %v449_v28 = vpop.permute.xlu1 %448 }
  0x98   : > { %944 = vmatprep.mubr.msk.f32.mxu0 %vm239_vm1, %v447_v27 }
  0x99   : > { %945 = vmatmul.mubr.msk.f32.gmra.mxu0 %vm239_vm1, %v449_v28 }
  0x9b   : > { %v548_v29 = vpop.permute.xlu0 %547  ;;  %v550_v30 = vpop.permute.xlu1 %549 }
  0x9c   : > { %952 = vmatprep.mubr.msk.f32.mxu1 %vm239_vm1, %v548_v29 }
  0x9d   : > { %953 = vmatmul.mubr.msk.f32.gmra.mxu1 %vm239_vm1, %v550_v30 }
  0xd7   : > { %v1060_v31 = vpop.f32.mrf.mxu0 }
  0xd8   : > { %v725_v46 = vmul.f32 %v1060_v31, %v1060_v31 }
  0xd9   : > { %v1062_v32 = vpop.f32.mrf.mxu0 }
  0xda   : > { %v724_v43 = vmul.f32 %v1062_v32, %v1062_v32 }
  0xdb   : > { %v1064_v33 = vpop.f32.mrf.mxu0 }
  0xdc   : > { %v727_v61 = vmul.f32 %v1064_v33, %v1064_v33 }
  0xdd   : > { %v1066_v36 = vpop.f32.mrf.mxu0 }
  0xde   : > { %v726_v62 = vmul.f32 %v1066_v36, %v1066_v36 }
 0x14c   : > { %v935_v34 = vpop.f32.mrf.mxu1 }
 0x14d   : > { %650 = vrot.lane.b32.xlu1 %v935_v34, %s980_s5  ;;  %v729_v42 = vmul.f32 %v935_v34, %v935_v34  ;;  %v713_v48 = vadd.f32 %v935_v34, %v1060_v31 }
 0x14e   : > { %v423_v35 = vpop.f32.mrf.mxu1 }
 0x14f   : > { %648 = vrot.lane.b32.xlu0 %v423_v35, %s980_s5  ;;  %v728_v40 = vmul.f32 %v423_v35, %v423_v35  ;;  %v712_v47 = vadd.f32 %v423_v35, %v1062_v32  ;;  %v733_v52 = vadd.f32 %v729_v42, %v725_v46 }
 0x150   : > { %v938_v37 = vpop.f32.mrf.mxu1 }
 0x151   : > { %v943_v38 = vpop.f32.mrf.mxu0  ;;  %v732_v49 = vadd.f32 %v728_v40, %v724_v43  ;;  %v731_v53 = vmul.f32 %v938_v37, %v938_v37  ;;  %v715_v5 = vadd.f32 %v938_v37, %v1064_v33 }
 0x152   : > { %v433_v39 = vpop.f32.mrf.mxu1  ;;  %666 = vrot.lane.b32.xlu1 %v943_v38, %s981_s6  ;;  %v737_v50 = vmul.f32 %v943_v38, %v943_v38  ;;  %v717_v56 = vadd.f32 %v943_v38, %v713_v48 }
 0x153   : > { %v524_v41 = vpop.f32.mrf.mxu0  ;;  %v730_v57 = vmul.f32 %v433_v39, %v433_v39  ;;  %v714_v6 = vadd.f32 %v433_v39, %v1066_v36  ;;  %v735_v8 = vadd.f32 %v731_v53, %v727_v61 }
 0x154   : > { %664 = vrot.lane.b32.xlu0 %v524_v41, %s981_s6  ;;  %v736_v44 = vmul.f32 %v524_v41, %v524_v41  ;;  %v716_v54 = vadd.f32 %v712_v47, %v524_v41  ;;  %v741_v0 = vadd.f32 %v737_v50, %v733_v52 }
 0x155   : > { %v951_v45 = vpop.f32.mrf.mxu1  ;;  %v734_v9 = vadd.f32 %v730_v57, %v726_v62 }
 0x156   : > { %654 = vrot.lane.b32.xlu1 %v938_v37, %s980_s5  ;;  %v740_v58 = vadd.f32 %v736_v44, %v732_v49  ;;  %v745_v59 = vmul.f32 %v951_v45, %v951_v45  ;;  %v721_v1 = vadd.f32 %v951_v45, %v717_v56 }
 0x157   : > { %v625_v51 = vpop.f32.mrf.mxu1 }
 0x158   : > { %v744_v55 = vmul.f32 %v625_v51, %v625_v51  ;;  %652 = vrot.lane.b32.xlu0 %v433_v39, %s980_s5  ;;  %v720_v63 = vadd.f32 %v716_v54, %v625_v51  ;;  %v749_v10 = vadd.f32 %v745_v59, %v741_v0  ;;  %v753_v16 = vsel %vm692_vm2, %v721_v1, 0.0 }
 0x159   : > { %v946_v60 = vpop.f32.mrf.mxu0 }
 0x15a   : > { %670 = vrot.lane.b32.xlu1 %v946_v60, %s981_s6  ;;  %v748_v2 = vadd.f32 %v744_v55, %v740_v58  ;;  %v739_v3 = vmul.f32 %v946_v60, %v946_v60  ;;  %v752_v12 = vsel %vm692_vm2, %v720_v63, 0.0  ;;  %v719_v13 = vadd.f32 %v946_v60, %v715_v5 }
 0x15b   : > { %v534_v4 = vpop.f32.mrf.mxu0  ;;  %v754_v24 = vadd.f32 %v753_v16, %v752_v12  ;;  %v766_v25 = vsel %vm692_vm2, %v749_v10, 0.0 }
 0x15c   : > { %v738_v7 = vmul.f32 %v534_v4, %v534_v4  ;;  %668 = vrot.lane.b32.xlu0 %v534_v4, %s981_s6  ;;  %v718_v14 = vadd.f32 %v714_v6, %v534_v4  ;;  %v765_v17 = vsel %vm692_vm2, %v748_v2, 0.0  ;;  %v743_v18 = vadd.f32 %v739_v3, %v735_v8 }
 0x15d   : > { %v954_v11 = vpop.f32.mrf.mxu1  ;;  %v767_v29 = vadd.f32 %v766_v25, %v765_v17 }
 0x15e   : > { %v747_v15 = vmul.f32 %v954_v11, %v954_v11  ;;  %682 = vrot.lane.b32.xlu1 %v951_v45, %s982_s7  ;;  %v742_v20 = vadd.f32 %v738_v7, %v734_v9  ;;  %v723_v21 = vadd.f32 %v954_v11, %v719_v13 }
 0x15f   : > { %v635_v19 = vpop.f32.mrf.mxu1 }
 0x160   : > { %v722_v22 = vadd.f32 %v718_v14, %v635_v19  ;;  %v746_v23 = vmul.f32 %v635_v19, %v635_v19  ;;  %680 = vrot.lane.b32.xlu0 %v625_v51, %s982_s7  ;;  %v751_v26 = vadd.f32 %v747_v15, %v743_v18  ;;  %v757_v34 = vsel %vm692_vm2, %v723_v21, 0.0 }
 0x162   : > { %v750_v27 = vadd.f32 %v746_v23, %v742_v20  ;;  %v755_v28 = vsel %vm692_vm2, %v722_v22, 0.0  ;;  %686 = vrot.lane.b32.xlu1 %v954_v11, %s982_s7  ;;  %v770_v39 = vsel %vm692_vm2, %v751_v26, 0.0 }
 0x163   : > { %v756_v30 = vadd.f32 %v755_v28, %v754_v24 }
 0x164   : > { %v768_v35 = vsel %vm692_vm2, %v750_v27, 0.0  ;;  %684 = vrot.lane.b32.xlu0 %v635_v19, %s982_s7 }
 0x165   : > { %v758_v37 = vadd.f32 %v757_v34, %v756_v30  ;;  %v769_v38 = vadd.f32 %v768_v35, %v767_v29 }
 0x167   : > { %v759_v40 = vrot.slane %v758_v37, 4  ;;  %v771_v41 = vadd.f32 %v770_v39, %v769_v38 }
 0x169   : > { %v760_v42 = vadd.f32 %v759_v40, %v758_v37  ;;  %v772_v43 = vrot.slane %v771_v41, 4 }
 0x16b   : > { %v761_v44 = vrot.slane %v760_v42, 2  ;;  %v773_v45 = vadd.f32 %v772_v43, %v771_v41 }
 0x16d   : > { %v762_v46 = vadd.f32 %v761_v44, %v760_v42  ;;  %v774_v47 = vrot.slane %v773_v45, 2 }
 0x16f   : > { %v763_v48 = vrot.slane %v762_v46, 1  ;;  %v775_v49 = vadd.f32 %v774_v47, %v773_v45 }
 0x171   : > { %v776_v50 = vrot.slane %v775_v49, 1  ;;  %v764_v51 = vadd.f32 %v763_v48, %v762_v46 }
 0x173   : > { %v777_v52 = vadd.f32 %v776_v50, %v775_v49 }
 0x175   : > { %v779_v53 = vsel %vm778_vm3, %v764_v51, %v777_v52 }
 0x176   : > { %781 = vst.msk [vmem:[%s211_s11] sm:$0x3] %vm780_vm4, %v779_v53 }
 0x1bf   : > { %v651_v54 = vpop.permute.xlu1 %650 }
 0x1c0   : > { %v694_v62 = vsel %vm692_vm2, %v1060_v31, %v651_v54 }
 0x1c1   : > { %v649_v55 = vpop.permute.xlu0 %648 }
 0x1c2   : > { %v693_v1 = vsel %vm692_vm2, %v1062_v32, %v649_v55 }
 0x1c4   : > { %v667_v56 = vpop.permute.xlu1 %666 }
 0x1c5   : > { %v699_v63 = vsel %vm697_vm5, %v694_v62, %v667_v56 }
 0x1c6   : > { %v665_v57 = vpop.permute.xlu0 %664 }
 0x1c7   : > { %v698_v3 = vsel %vm697_vm5, %v693_v1, %v665_v57 }
 0x1c8   : > { %v655_v58 = vpop.permute.xlu1 %654 }
 0x1c9   : > { %v696_v31 = vsel %vm692_vm2, %v1064_v33, %v655_v58 }
 0x1ca   : > { %v653_v59 = vpop.permute.xlu0 %652 }
 0x1cb   : > { %v695_v32 = vsel %vm692_vm2, %v1066_v36, %v653_v59 }
 0x1cc   : > { %v671_v60 = vpop.permute.xlu1 %670 }
 0x1cd   : > { %v701_v6 = vsel %vm697_vm5, %v696_v31, %v671_v60 }
 0x1ce   : > { %v669_v61 = vpop.permute.xlu0 %668 }
 0x1cf   : > { %v700_v9 = vsel %vm697_vm5, %v695_v32, %v669_v61 }
 0x1d0   : > { %v683_v0 = vpop.permute.xlu1 %682 }
 0x1d1   : > { %v704_v2 = vsel %vm702_vm6, %v699_v63, %v683_v0 }
 0x1d2   : > { %709 = vst.msk [vmem:[%s206_s14 + $0x8] sm:$0xff] %vm707_vm7, %v704_v2  ;;  %v681_v4 = vpop.permute.xlu0 %680 }
 0x1d3   : > { %v703_v5 = vsel %vm702_vm6, %v698_v3, %v681_v4 }
 0x1d4   : > { %708 = vst.msk [vmem:[%s206_s14] sm:$0xff] %vm707_vm7, %v703_v5  ;;  %v687_v7 = vpop.permute.xlu1 %686 }
 0x1d5   : > { %v706_v8 = vsel %vm702_vm6, %v701_v6, %v687_v7 }
 0x1d6   : > { %711 = vst.msk [vmem:[%s206_s14 + $0x18] sm:$0xff] %vm707_vm7, %v706_v8  ;;  %v685_v10 = vpop.permute.xlu0 %684 }
 0x1d7   : > { %v705_v11 = vsel %vm702_vm6, %v700_v9, %v685_v10 }
 0x1d8   : > { %710 = vst.msk [vmem:[%s206_s14 + $0x10] sm:$0xff] %vm707_vm7, %v705_v11 }
 0x1d9 PF: > { %s15_s15 = sadd.s32 1, %s975_s15  }
 0x1da   : > { %p12_p5 = scmp.ge.s32.totalorder %s15_s15, 6  }
 0x1dc   :  { %14 = sbr.rel (!%p12_p5) target bundleno = 1 (0x1), region = 74 }

</bundles_post_ra>
